<compile_context>
chip_gen: v5e
topology: v5e:2x2
jax: 0.10.0
libtpu: 0.0.40
codegen_flags: <defaults>
</compile_context>

<pallas_src>
import math

import jax
import jax.numpy as jnp
from jax.experimental import pallas as pl
from jax.experimental.pallas import tpu as pltpu

K = 3            # kernel_size of the module
KK = K * K


# --------------------------------------------------------------------------- #
# Kernel
# --------------------------------------------------------------------------- #
def _make_census_kernel(n_blk, thp, hp, lw, w):
    """Build the kernel for static tile sizes.

    n_blk : (b, c) images folded into one grid step
    thp   : packed rows per tile
    hp    : packed rows per image (H // r)
    lw    : lane width of one packed row (r * W)
    w     : original image width
    """

    def kernel(img_ref, out_ref, buf_ref, sem_ref):
        n0 = pl.program_id(0) * n_blk
        t = pl.program_id(1)
        num_t = pl.num_programs(1)

        # ---- manual halo DMA: tile rows + one packed halo row above/below ----
        # Input is ~1/9 of the HBM bytes; its wait overlaps the previous step's
        # output write-back, so the roofline stays output-bound.
        top_src = jnp.maximum(t * thp - 1, 0)           # clamped; masked below
        bot_src = jnp.minimum(t * thp + thp, hp - 1)    # clamped; masked below
        cp_mid = pltpu.make_async_copy(
            img_ref.at[pl.ds(n0, n_blk), pl.ds(t * thp, thp), :],
            buf_ref.at[:, pl.ds(1, thp), :], sem_ref.at[0])
        cp_top = pltpu.make_async_copy(
            img_ref.at[pl.ds(n0, n_blk), pl.ds(top_src, 1), :],
            buf_ref.at[:, pl.ds(0, 1), :], sem_ref.at[1])
        cp_bot = pltpu.make_async_copy(
            img_ref.at[pl.ds(n0, n_blk), pl.ds(bot_src, 1), :],
            buf_ref.at[:, pl.ds(thp + 1, 1), :], sem_ref.at[2])
        cp_mid.start(); cp_top.start(); cp_bot.start()
        cp_mid.wait(); cp_top.wait(); cp_bot.wait()

        # ---- border masks (hoisted: depend only on the tile index) ----------
        jj = jax.lax.broadcasted_iota(jnp.int32, (thp, lw), 1)
        ii = jax.lax.broadcasted_iota(jnp.int32, (thp, lw), 0)
        col = jj % w if lw != w else jj                  # image column of a lane
        left_col = col == 0
        right_col = col == w - 1
        first_img_row = jnp.logical_and(
            t == 0, jnp.logical_and(ii == 0, jj < w))
        last_img_row = jnp.logical_and(
            t == num_t - 1, jnp.logical_and(ii == thp - 1, jj >= lw - w))

        for n in range(n_blk):
            b2 = buf_ref[n]                              # (thp + 2, lw)
            center = b2[1:thp + 1, :]
            for k in range(KK):
                dh, dw = divmod(k, K)
                if dh == 1 and dw == 1:
                    # neighbor == the pixel itself: (x > x) is always False.
                    out_ref[n, k] = jnp.zeros((thp, lw), jnp.float32)
                    continue
                # Flat offset of neighbor (dh, dw) in the packed row layout.
                d = (dh - 1) * w + (dw - 1)
                shift = (-d) % lw
                rolled = pltpu.roll(b2, shift, axis=1) if shift else b2
                mid = rolled[1:thp + 1, :]
                if d < 0:
                    if -d >= lw:
                        neigh = rolled[0:thp, :]
                    else:
                        neigh = jnp.where(jj < -d, rolled[0:thp, :], mid)
                else:
                    if d >= lw:
                        neigh = rolled[2:thp + 2, :]
                    else:
                        neigh = jnp.where(jj >= lw - d, rolled[2:thp + 2, :], mid)
                # Out-of-image neighbors behave like the zero padding of conv2d.
                invalid = None
                if dh == 0:
                    invalid = first_img_row
                elif dh == 2:
                    invalid = last_img_row
                if dw == 0:
                    invalid = left_col if invalid is None else jnp.logical_or(invalid, left_col)
                elif dw == 2:
                    invalid = right_col if invalid is None else jnp.logical_or(invalid, right_col)
                if invalid is not None:
                    neigh = jnp.where(invalid, jnp.zeros_like(neigh), neigh)
                out_ref[n, k] = (neigh > center).astype(jnp.float32)

    return kernel


# --------------------------------------------------------------------------- #
# Tiling / budgeting helpers
# --------------------------------------------------------------------------- #
def _vmem_budget_and_limit():
    """Generation-aware VMEM budgeting (v5e/v6e: 128 MiB, v7x: 64 MiB/TC)."""
    cap = 64 * 1024 * 1024
    try:
        info = pltpu.get_tpu_info()
        cap = int(getattr(info, "vmem_capacity_bytes", cap)) or cap
    except Exception:
        pass
    limit = min((cap * 3) // 4, 100 * 1024 * 1024)
    budget = limit // 3          # declared per-step footprint; rest = compiler headroom
    return budget, limit


def _footprint_bytes(n_blk, thp, lw, itemsize):
    buf = n_blk * (thp + 2) * lw * itemsize              # halo'd input scratch
    outb = n_blk * KK * thp * lw * 4                     # f32 output block
    return buf + 2 * outb                                # output is double-buffered


def _row_fold(h, w):
    """Image rows folded into one lane-dense packed row ((r*W) % 128 == 0)."""
    if w % 128 == 0:
        return 1
    r = 128 // math.gcd(w, 128)
    return r if h % r == 0 else 1   # fall back to natural layout (masked stores)


def _select_tiling(n, hp, lw, itemsize, budget, tile_rows=None, n_block=None):
    # Candidate packed-row tiles: multiples of 8 dividing hp, or full hp.
    cands = sorted({hp} | {d for d in range(8, hp, 8) if hp % d == 0},
                   reverse=True)
    if tile_rows is not None:
        assert hp % tile_rows == 0 and (tile_rows == hp or tile_rows % 8 == 0), \
            "tile_h must give a packed-row tile that is a multiple of 8 or full height"
        thp = tile_rows
    else:
        thp = None
        for c in cands:
            if _footprint_bytes(1, c, lw, itemsize) <= budget:
                thp = c
                break
        if thp is None:
            thp = cands[-1]          # smallest legal tile; never a VMEM blow-up path
    if n_block is not None:
        assert n % n_block == 0
        nb = n_block
    else:
        nb = 1
        for c in (2, 4, 8):          # cap folding at 8 images per step
            if n % c == 0 and _footprint_bytes(c, thp, lw, itemsize) <= budget:
                nb = c
        # keep >= 2 parallel grid steps so both v7x TensorCores get work
        while (n // nb) * (hp // thp) < 2 and nb > 1:
            nb //= 2
        if (n // nb) * (hp // thp) < 2:
            for c in cands:
                if c < thp and hp % c == 0:
                    thp = c
                    break
    return thp, nb


# --------------------------------------------------------------------------- #
# Wrapper
# --------------------------------------------------------------------------- #
def census_transform(img, kernel_size=K, tile_h=None, n_block=None):
    """img: (B, C, H, W) float -> (B, C*9, H, W) float32 census bits."""
    assert kernel_size == K, "kernel compiled for kernel_size=3"
    B, C, H, W = img.shape
    N = B * C
    r = _row_fold(H, W)
    hp, lw = H // r, r * W
    itemsize = jnp.dtype(img.dtype).itemsize

    budget, vmem_limit = _vmem_budget_and_limit()
    tile_rows = None
    if tile_h is not None:
        assert tile_h % r == 0, f"tile_h must be a multiple of the row-fold factor {r}"
        tile_rows = tile_h // r
    thp, nb = _select_tiling(N, hp, lw, itemsize, budget, tile_rows, n_block)
    num_n, num_t = N // nb, hp // thp

    # Free, order-preserving view: (B, C, H, W) -> (N, H/r, r*W); stays in HBM.
    img_p = img.reshape(N, hp, lw)

    kernel = _make_census_kernel(nb, thp, hp, lw, W)
    out = pl.pallas_call(
        kernel,
        out_shape=jax.ShapeDtypeStruct((N, KK, hp, lw), jnp.float32),
        grid_spec=pltpu.PrefetchScalarGridSpec(
            num_scalar_prefetch=0,
            grid=(num_n, num_t),
            in_specs=[pl.BlockSpec(memory_space=pl.ANY)],   # raw HBM; halo DMA'd in-kernel
            out_specs=pl.BlockSpec((nb, KK, thp, lw),
                                   lambda n, t: (n, 0, t, 0)),
            scratch_shapes=[
                pltpu.VMEM((nb, thp + 2, lw), img.dtype),
                pltpu.SemaphoreType.DMA((3,)),
            ],
        ),
        compiler_params=pltpu.CompilerParams(
            dimension_semantics=("parallel", "parallel"),
            vmem_limit_bytes=vmem_limit),
    )(img_p)

    # (N, 9, H/r, r*W) -> (B, C*9, H, W): identical element order, free reshape.
    return out.reshape(B, C * KK, H, W)


# --------------------------------------------------------------------------- #
# Pure-JAX reference mirroring the PyTorch forward
# --------------------------------------------------------------------------- #
def _census_reference(img):
    B, C, H, W = img.shape
    pad = K // 2
    img_p = jnp.pad(img, ((0, 0), (0, 0), (pad, pad), (pad, pad)))
    outs = []
    for k in range(KK):
        dh, dw = divmod(k, K)
        shifted = img_p[:, :, dh:dh + H, dw:dw + W]
        outs.append(((shifted - img) > 0).astype(jnp.float32))
    return jnp.stack(outs, axis=2).reshape(B, C * KK, H, W)


if __name__ == "__main__":
    key = jax.random.PRNGKey(0)

    # Shape consistent with the module's usage; W=16 exercises the packed
    # lane-dense layout (8 image rows folded into one 128-lane row).
    B, C, H, W = 2, 4, 16, 16
    x = jax.random.uniform(key, (B, C, H, W), dtype=jnp.float32) - 0.5
    out = jax.block_until_ready(census_transform(x))
    assert out.shape == (B, C * KK, H, W), out.shape
    assert out.dtype == jnp.float32
    assert bool(jnp.all(out == _census_reference(x))), "mismatch (packed path)"

    # Lane-native W (multiple of 128) with several H tiles -> halo-DMA path.
    x2 = jax.random.uniform(jax.random.PRNGKey(1), (1, 2, 32, 128),
                            dtype=jnp.float32) - 0.5
    out2 = jax.block_until_ready(census_transform(x2, tile_h=8))
    assert bool(jnp.all(out2 == _census_reference(x2))), "mismatch (r=1 tiled path)"

    # Packed W with several H tiles (row folding + halo DMA together).
    x3 = jax.random.uniform(jax.random.PRNGKey(2), (1, 1, 256, 16),
                            dtype=jnp.float32) - 0.5
    out3 = jax.block_until_ready(census_transform(x3, tile_h=64))
    assert bool(jnp.all(out3 == _census_reference(x3))), "mismatch (packed tiled path)"

    print("KERNEL_OK")
</pallas_src>

<mosaic_0001>
module attributes {stable_mosaic.version = 11 : i64} {
  func.func @kernel(%arg0: i32, %arg1: i32, %arg2: memref<8x2x128xf32, #tpu.memory_space<any>>, %arg3: memref<4x9x2x128xf32, #tpu.memory_space<vmem>>, %arg4: memref<4x4x128xf32, #tpu.memory_space<vmem>>, %arg5: memref<3x!tpu.dma_semaphore, #tpu.memory_space<semaphore_mem>>) attributes {dimension_semantics = [#tpu.dimension_semantics<parallel>, #tpu.dimension_semantics<parallel>], iteration_bounds = array<i64: 2, 1>, scalar_prefetch = 0 : i64, scratch_operands = 2 : i64, tpu.core_type = #tpu.core_type<tc>, window_params = [{}, {transform_indices = @transform_1, window_bounds = array<i64: 4, 9, 2, 128>}]} {
    %c4_i32 = arith.constant 4 : i32
    %0 = arith.muli %arg0, %c4_i32 : i32
    %c2_i32 = arith.constant 2 : i32
    %1 = arith.muli %arg1, %c2_i32 : i32
    %c1_i32 = arith.constant 1 : i32
    %2 = arith.subi %1, %c1_i32 : i32
    %c0_i32 = arith.constant 0 : i32
    %3 = arith.maxsi %2, %c0_i32 : i32
    %c2_i32_0 = arith.constant 2 : i32
    %4 = arith.muli %arg1, %c2_i32_0 : i32
    %c2_i32_1 = arith.constant 2 : i32
    %5 = arith.addi %4, %c2_i32_1 : i32
    %c1_i32_2 = arith.constant 1 : i32
    %6 = arith.minsi %5, %c1_i32_2 : i32
    %c2_i32_3 = arith.constant 2 : i32
    %7 = arith.muli %arg1, %c2_i32_3 : i32
    %c0_i32_4 = arith.constant 0 : i32
    %c0_i32_5 = arith.constant 0 : i32
    %8 = tpu.memref_slice %arg2[%0, %7, %c0_i32_5] : memref<8x2x128xf32, #tpu.memory_space<any>> -> memref<4x2x128xf32, #tpu.memory_space<any>>
    %c0_i32_6 = arith.constant 0 : i32
    %c1_i32_7 = arith.constant 1 : i32
    %c0_i32_8 = arith.constant 0 : i32
    %9 = tpu.memref_slice %arg4[%c0_i32_6, %c1_i32_7, %c0_i32_8] : memref<4x4x128xf32, #tpu.memory_space<vmem>> -> memref<4x2x128xf32, #tpu.memory_space<vmem>>
    %10 = tpu.memref_slice %arg5[%c0_i32_4] : memref<3x!tpu.dma_semaphore, #tpu.memory_space<semaphore_mem>> -> memref<1x!tpu.dma_semaphore, #tpu.memory_space<semaphore_mem>>
    %11 = tpu.memref_squeeze %10 : memref<1x!tpu.dma_semaphore, #tpu.memory_space<semaphore_mem>> -> memref<!tpu.dma_semaphore, #tpu.memory_space<semaphore_mem>>
    tpu.enqueue_dma source(%8 : memref<4x2x128xf32, #tpu.memory_space<any>>) target(%9 : memref<4x2x128xf32, #tpu.memory_space<vmem>>) target_semaphore(%11 : memref<!tpu.dma_semaphore, #tpu.memory_space<semaphore_mem>>)
    %c1_i32_9 = arith.constant 1 : i32
    %c0_i32_10 = arith.constant 0 : i32
    %12 = tpu.memref_slice %arg2[%0, %3, %c0_i32_10] : memref<8x2x128xf32, #tpu.memory_space<any>> -> memref<4x1x128xf32, #tpu.memory_space<any>>
    %c0_i32_11 = arith.constant 0 : i32
    %c0_i32_12 = arith.constant 0 : i32
    %c0_i32_13 = arith.constant 0 : i32
    %13 = tpu.memref_slice %arg4[%c0_i32_11, %c0_i32_12, %c0_i32_13] : memref<4x4x128xf32, #tpu.memory_space<vmem>> -> memref<4x1x128xf32, #tpu.memory_space<vmem>>
    %14 = tpu.memref_slice %arg5[%c1_i32_9] : memref<3x!tpu.dma_semaphore, #tpu.memory_space<semaphore_mem>> -> memref<1x!tpu.dma_semaphore, #tpu.memory_space<semaphore_mem>>
    %15 = tpu.memref_squeeze %14 : memref<1x!tpu.dma_semaphore, #tpu.memory_space<semaphore_mem>> -> memref<!tpu.dma_semaphore, #tpu.memory_space<semaphore_mem>>
    tpu.enqueue_dma source(%12 : memref<4x1x128xf32, #tpu.memory_space<any>>) target(%13 : memref<4x1x128xf32, #tpu.memory_space<vmem>>) target_semaphore(%15 : memref<!tpu.dma_semaphore, #tpu.memory_space<semaphore_mem>>)
    %c2_i32_14 = arith.constant 2 : i32
    %c0_i32_15 = arith.constant 0 : i32
    %16 = tpu.memref_slice %arg2[%0, %6, %c0_i32_15] : memref<8x2x128xf32, #tpu.memory_space<any>> -> memref<4x1x128xf32, #tpu.memory_space<any>>
    %c0_i32_16 = arith.constant 0 : i32
    %c3_i32 = arith.constant 3 : i32
    %c0_i32_17 = arith.constant 0 : i32
    %17 = tpu.memref_slice %arg4[%c0_i32_16, %c3_i32, %c0_i32_17] : memref<4x4x128xf32, #tpu.memory_space<vmem>> -> memref<4x1x128xf32, #tpu.memory_space<vmem>>
    %18 = tpu.memref_slice %arg5[%c2_i32_14] : memref<3x!tpu.dma_semaphore, #tpu.memory_space<semaphore_mem>> -> memref<1x!tpu.dma_semaphore, #tpu.memory_space<semaphore_mem>>
    %19 = tpu.memref_squeeze %18 : memref<1x!tpu.dma_semaphore, #tpu.memory_space<semaphore_mem>> -> memref<!tpu.dma_semaphore, #tpu.memory_space<semaphore_mem>>
    tpu.enqueue_dma source(%16 : memref<4x1x128xf32, #tpu.memory_space<any>>) target(%17 : memref<4x1x128xf32, #tpu.memory_space<vmem>>) target_semaphore(%19 : memref<!tpu.dma_semaphore, #tpu.memory_space<semaphore_mem>>)
    %c0_i32_18 = arith.constant 0 : i32
    %c0_i32_19 = arith.constant 0 : i32
    %20 = tpu.memref_slice %arg2[%0, %7, %c0_i32_19] : memref<8x2x128xf32, #tpu.memory_space<any>> -> memref<4x2x128xf32, #tpu.memory_space<any>>
    %c0_i32_20 = arith.constant 0 : i32
    %c1_i32_21 = arith.constant 1 : i32
    %c0_i32_22 = arith.constant 0 : i32
    %21 = tpu.memref_slice %arg4[%c0_i32_20, %c1_i32_21, %c0_i32_22] : memref<4x4x128xf32, #tpu.memory_space<vmem>> -> memref<4x2x128xf32, #tpu.memory_space<vmem>>
    %22 = tpu.memref_slice %arg5[%c0_i32_18] : memref<3x!tpu.dma_semaphore, #tpu.memory_space<semaphore_mem>> -> memref<1x!tpu.dma_semaphore, #tpu.memory_space<semaphore_mem>>
    %23 = tpu.memref_squeeze %22 : memref<1x!tpu.dma_semaphore, #tpu.memory_space<semaphore_mem>> -> memref<!tpu.dma_semaphore, #tpu.memory_space<semaphore_mem>>
    tpu.wait_dma2 semaphore(%23 : memref<!tpu.dma_semaphore, #tpu.memory_space<semaphore_mem>>) src(%20 : memref<4x2x128xf32, #tpu.memory_space<any>>) dst(%21 : memref<4x2x128xf32, #tpu.memory_space<vmem>>)
    %c1_i32_23 = arith.constant 1 : i32
    %c0_i32_24 = arith.constant 0 : i32
    %24 = tpu.memref_slice %arg2[%0, %3, %c0_i32_24] : memref<8x2x128xf32, #tpu.memory_space<any>> -> memref<4x1x128xf32, #tpu.memory_space<any>>
    %c0_i32_25 = arith.constant 0 : i32
    %c0_i32_26 = arith.constant 0 : i32
    %c0_i32_27 = arith.constant 0 : i32
    %25 = tpu.memref_slice %arg4[%c0_i32_25, %c0_i32_26, %c0_i32_27] : memref<4x4x128xf32, #tpu.memory_space<vmem>> -> memref<4x1x128xf32, #tpu.memory_space<vmem>>
    %26 = tpu.memref_slice %arg5[%c1_i32_23] : memref<3x!tpu.dma_semaphore, #tpu.memory_space<semaphore_mem>> -> memref<1x!tpu.dma_semaphore, #tpu.memory_space<semaphore_mem>>
    %27 = tpu.memref_squeeze %26 : memref<1x!tpu.dma_semaphore, #tpu.memory_space<semaphore_mem>> -> memref<!tpu.dma_semaphore, #tpu.memory_space<semaphore_mem>>
    tpu.wait_dma2 semaphore(%27 : memref<!tpu.dma_semaphore, #tpu.memory_space<semaphore_mem>>) src(%24 : memref<4x1x128xf32, #tpu.memory_space<any>>) dst(%25 : memref<4x1x128xf32, #tpu.memory_space<vmem>>)
    %c2_i32_28 = arith.constant 2 : i32
    %c0_i32_29 = arith.constant 0 : i32
    %28 = tpu.memref_slice %arg2[%0, %6, %c0_i32_29] : memref<8x2x128xf32, #tpu.memory_space<any>> -> memref<4x1x128xf32, #tpu.memory_space<any>>
    %c0_i32_30 = arith.constant 0 : i32
    %c3_i32_31 = arith.constant 3 : i32
    %c0_i32_32 = arith.constant 0 : i32
    %29 = tpu.memref_slice %arg4[%c0_i32_30, %c3_i32_31, %c0_i32_32] : memref<4x4x128xf32, #tpu.memory_space<vmem>> -> memref<4x1x128xf32, #tpu.memory_space<vmem>>
    %30 = tpu.memref_slice %arg5[%c2_i32_28] : memref<3x!tpu.dma_semaphore, #tpu.memory_space<semaphore_mem>> -> memref<1x!tpu.dma_semaphore, #tpu.memory_space<semaphore_mem>>
    %31 = tpu.memref_squeeze %30 : memref<1x!tpu.dma_semaphore, #tpu.memory_space<semaphore_mem>> -> memref<!tpu.dma_semaphore, #tpu.memory_space<semaphore_mem>>
    tpu.wait_dma2 semaphore(%31 : memref<!tpu.dma_semaphore, #tpu.memory_space<semaphore_mem>>) src(%28 : memref<4x1x128xf32, #tpu.memory_space<any>>) dst(%29 : memref<4x1x128xf32, #tpu.memory_space<vmem>>)
    %32 = tpu.iota {dimensions = array<i32: 1>} : vector<2x128xi32>
    %33 = tpu.iota {dimensions = array<i32: 0>} : vector<2x128xi32>
    %c16_i32 = arith.constant 16 : i32
    %c0_i32_33 = arith.constant 0 : i32
    %34 = arith.cmpi eq, %c16_i32, %c0_i32_33 : i32
    %c1_i32_34 = arith.constant 1 : i32
    %35 = arith.select %34, %c1_i32_34, %c16_i32 : i32
    %36 = vector.broadcast %35 : i32 to vector<2x128xi32>
    %37 = arith.remsi %32, %36 : vector<2x128xi32>
    %c0_i32_35 = arith.constant 0 : i32
    %38 = vector.broadcast %c0_i32_35 : i32 to vector<2x128xi32>
    %39 = arith.cmpi ne, %37, %38 : vector<2x128xi32>
    %c0_i32_36 = arith.constant 0 : i32
    %40 = vector.broadcast %c0_i32_36 : i32 to vector<2x128xi32>
    %41 = arith.cmpi slt, %37, %40 : vector<2x128xi32>
    %c0_i32_37 = arith.constant 0 : i32
    %42 = arith.cmpi slt, %35, %c0_i32_37 : i32
    %43 = vector.broadcast %42 : i1 to vector<2x128xi1>
    %44 = vector.broadcast %43 : vector<2x128xi1> to vector<2x128xi1>
    %45 = arith.xori %41, %44 : vector<2x128xi1>
    %46 = arith.andi %45, %39 : vector<2x128xi1>
    %47 = vector.broadcast %35 : i32 to vector<2x128xi32>
    %48 = arith.addi %37, %47 : vector<2x128xi32>
    %49 = arith.select %46, %48, %37 : vector<2x128xi1>, vector<2x128xi32>
    %c0_i32_38 = arith.constant 0 : i32
    %50 = vector.broadcast %c0_i32_38 : i32 to vector<2x128xi32>
    %51 = arith.cmpi eq, %49, %50 : vector<2x128xi32>
    %c15_i32 = arith.constant 15 : i32
    %52 = vector.broadcast %c15_i32 : i32 to vector<2x128xi32>
    %53 = arith.cmpi eq, %49, %52 : vector<2x128xi32>
    %c0_i32_39 = arith.constant 0 : i32
    %54 = arith.cmpi eq, %arg1, %c0_i32_39 : i32
    %c0_i32_40 = arith.constant 0 : i32
    %55 = vector.broadcast %c0_i32_40 : i32 to vector<2x128xi32>
    %56 = arith.cmpi eq, %33, %55 : vector<2x128xi32>
    %c16_i32_41 = arith.constant 16 : i32
    %57 = vector.broadcast %c16_i32_41 : i32 to vector<2x128xi32>
    %58 = arith.cmpi slt, %32, %57 : vector<2x128xi32>
    %59 = arith.andi %56, %58 : vector<2x128xi1>
    %60 = vector.broadcast %54 : i1 to vector<2x128xi1>
    %61 = arith.andi %60, %59 : vector<2x128xi1>
    %c0_i32_42 = arith.constant 0 : i32
    %62 = arith.cmpi eq, %arg1, %c0_i32_42 : i32
    %c1_i32_43 = arith.constant 1 : i32
    %63 = vector.broadcast %c1_i32_43 : i32 to vector<2x128xi32>
    %64 = arith.cmpi eq, %33, %63 : vector<2x128xi32>
    %c112_i32 = arith.constant 112 : i32
    %65 = vector.broadcast %c112_i32 : i32 to vector<2x128xi32>
    %66 = arith.cmpi sge, %32, %65 : vector<2x128xi32>
    %67 = arith.andi %64, %66 : vector<2x128xi1>
    %68 = vector.broadcast %62 : i1 to vector<2x128xi1>
    %69 = arith.andi %68, %67 : vector<2x128xi1>
    %c0 = arith.constant 0 : index
    %c0_44 = arith.constant 0 : index
    %c0_45 = arith.constant 0 : index
    %70 = vector.load %arg4[%c0, %c0_44, %c0_45] : memref<4x4x128xf32, #tpu.memory_space<vmem>>, vector<1x4x128xf32>
    %71 = vector.shape_cast %70 : vector<1x4x128xf32> to vector<4x128xf32>
    %72 = vector.extract_strided_slice %71 {offsets = [1, 0], sizes = [2, 128], strides = [1, 1]} : vector<4x128xf32> to vector<2x128xf32>
    %c17_i32 = arith.constant 17 : i32
    %73 = tpu.dynamic_rotate %71 by %c17_i32 dim 1 : vector<4x128xf32>, i32 -> vector<4x128xf32>
    %74 = vector.extract_strided_slice %73 {offsets = [1, 0], sizes = [2, 128], strides = [1, 1]} : vector<4x128xf32> to vector<2x128xf32>
    %c17_i32_46 = arith.constant 17 : i32
    %75 = vector.broadcast %c17_i32_46 : i32 to vector<2x128xi32>
    %76 = arith.cmpi slt, %32, %75 : vector<2x128xi32>
    %77 = vector.extract_strided_slice %73 {offsets = [0, 0], sizes = [2, 128], strides = [1, 1]} : vector<4x128xf32> to vector<2x128xf32>
    %78 = arith.select %76, %77, %74 : vector<2x128xi1>, vector<2x128xf32>
    %79 = arith.ori %61, %51 : vector<2x128xi1>
    %cst = arith.constant 0.000000e+00 : f32
    %80 = vector.broadcast %cst : f32 to vector<2x128xf32>
    %81 = arith.select %79, %80, %78 : vector<2x128xi1>, vector<2x128xf32>
    %82 = arith.cmpf ogt, %81, %72 : vector<2x128xf32>
    %83 = arith.extui %82 : vector<2x128xi1> to vector<2x128xi32>
    %84 = arith.sitofp %83 : vector<2x128xi32> to vector<2x128xf32>
    %c0_47 = arith.constant 0 : index
    %c0_48 = arith.constant 0 : index
    %c0_49 = arith.constant 0 : index
    %c0_50 = arith.constant 0 : index
    %85 = vector.load %arg3[%c0_47, %c0_48, %c0_49, %c0_50] : memref<4x9x2x128xf32, #tpu.memory_space<vmem>>, vector<1x1x2x128xf32>
    %86 = vector.shape_cast %85 : vector<1x1x2x128xf32> to vector<2x128xf32>
    %87 = vector.shape_cast %84 : vector<2x128xf32> to vector<1x1x2x128xf32>
    tpu.vector_store %arg3[%c0_47, %c0_48, %c0_49, %c0_50], %87 {strides = array<i32>} : memref<4x9x2x128xf32, #tpu.memory_space<vmem>>, vector<1x1x2x128xf32>,
    %c16_i32_51 = arith.constant 16 : i32
    %88 = tpu.dynamic_rotate %71 by %c16_i32_51 dim 1 : vector<4x128xf32>, i32 -> vector<4x128xf32>
    %89 = vector.extract_strided_slice %88 {offsets = [1, 0], sizes = [2, 128], strides = [1, 1]} : vector<4x128xf32> to vector<2x128xf32>
    %c16_i32_52 = arith.constant 16 : i32
    %90 = vector.broadcast %c16_i32_52 : i32 to vector<2x128xi32>
    %91 = arith.cmpi slt, %32, %90 : vector<2x128xi32>
    %92 = vector.extract_strided_slice %88 {offsets = [0, 0], sizes = [2, 128], strides = [1, 1]} : vector<4x128xf32> to vector<2x128xf32>
    %93 = arith.select %91, %92, %89 : vector<2x128xi1>, vector<2x128xf32>
    %cst_53 = arith.constant 0.000000e+00 : f32
    %94 = vector.broadcast %cst_53 : f32 to vector<2x128xf32>
    %95 = arith.select %61, %94, %93 : vector<2x128xi1>, vector<2x128xf32>
    %96 = arith.cmpf ogt, %95, %72 : vector<2x128xf32>
    %97 = arith.extui %96 : vector<2x128xi1> to vector<2x128xi32>
    %98 = arith.sitofp %97 : vector<2x128xi32> to vector<2x128xf32>
    %c0_54 = arith.constant 0 : index
    %c1 = arith.constant 1 : index
    %c0_55 = arith.constant 0 : index
    %c0_56 = arith.constant 0 : index
    %99 = vector.load %arg3[%c0_54, %c1, %c0_55, %c0_56] : memref<4x9x2x128xf32, #tpu.memory_space<vmem>>, vector<1x1x2x128xf32>
    %100 = vector.shape_cast %99 : vector<1x1x2x128xf32> to vector<2x128xf32>
    %101 = vector.shape_cast %98 : vector<2x128xf32> to vector<1x1x2x128xf32>
    tpu.vector_store %arg3[%c0_54, %c1, %c0_55, %c0_56], %101 {strides = array<i32>} : memref<4x9x2x128xf32, #tpu.memory_space<vmem>>, vector<1x1x2x128xf32>,
    %c15_i32_57 = arith.constant 15 : i32
    %102 = tpu.dynamic_rotate %71 by %c15_i32_57 dim 1 : vector<4x128xf32>, i32 -> vector<4x128xf32>
    %103 = vector.extract_strided_slice %102 {offsets = [1, 0], sizes = [2, 128], strides = [1, 1]} : vector<4x128xf32> to vector<2x128xf32>
    %c15_i32_58 = arith.constant 15 : i32
    %104 = vector.broadcast %c15_i32_58 : i32 to vector<2x128xi32>
    %105 = arith.cmpi slt, %32, %104 : vector<2x128xi32>
    %106 = vector.extract_strided_slice %102 {offsets = [0, 0], sizes = [2, 128], strides = [1, 1]} : vector<4x128xf32> to vector<2x128xf32>
    %107 = arith.select %105, %106, %103 : vector<2x128xi1>, vector<2x128xf32>
    %108 = arith.ori %61, %53 : vector<2x128xi1>
    %cst_59 = arith.constant 0.000000e+00 : f32
    %109 = vector.broadcast %cst_59 : f32 to vector<2x128xf32>
    %110 = arith.select %108, %109, %107 : vector<2x128xi1>, vector<2x128xf32>
    %111 = arith.cmpf ogt, %110, %72 : vector<2x128xf32>
    %112 = arith.extui %111 : vector<2x128xi1> to vector<2x128xi32>
    %113 = arith.sitofp %112 : vector<2x128xi32> to vector<2x128xf32>
    %c0_60 = arith.constant 0 : index
    %c2 = arith.constant 2 : index
    %c0_61 = arith.constant 0 : index
    %c0_62 = arith.constant 0 : index
    %114 = vector.load %arg3[%c0_60, %c2, %c0_61, %c0_62] : memref<4x9x2x128xf32, #tpu.memory_space<vmem>>, vector<1x1x2x128xf32>
    %115 = vector.shape_cast %114 : vector<1x1x2x128xf32> to vector<2x128xf32>
    %116 = vector.shape_cast %113 : vector<2x128xf32> to vector<1x1x2x128xf32>
    tpu.vector_store %arg3[%c0_60, %c2, %c0_61, %c0_62], %116 {strides = array<i32>} : memref<4x9x2x128xf32, #tpu.memory_space<vmem>>, vector<1x1x2x128xf32>,
    %c1_i32_63 = arith.constant 1 : i32
    %117 = tpu.dynamic_rotate %71 by %c1_i32_63 dim 1 : vector<4x128xf32>, i32 -> vector<4x128xf32>
    %118 = vector.extract_strided_slice %117 {offsets = [1, 0], sizes = [2, 128], strides = [1, 1]} : vector<4x128xf32> to vector<2x128xf32>
    %c1_i32_64 = arith.constant 1 : i32
    %119 = vector.broadcast %c1_i32_64 : i32 to vector<2x128xi32>
    %120 = arith.cmpi slt, %32, %119 : vector<2x128xi32>
    %121 = vector.extract_strided_slice %117 {offsets = [0, 0], sizes = [2, 128], strides = [1, 1]} : vector<4x128xf32> to vector<2x128xf32>
    %122 = arith.select %120, %121, %118 : vector<2x128xi1>, vector<2x128xf32>
    %cst_65 = arith.constant 0.000000e+00 : f32
    %123 = vector.broadcast %cst_65 : f32 to vector<2x128xf32>
    %124 = arith.select %51, %123, %122 : vector<2x128xi1>, vector<2x128xf32>
    %125 = arith.cmpf ogt, %124, %72 : vector<2x128xf32>
    %126 = arith.extui %125 : vector<2x128xi1> to vector<2x128xi32>
    %127 = arith.sitofp %126 : vector<2x128xi32> to vector<2x128xf32>
    %c0_66 = arith.constant 0 : index
    %c3 = arith.constant 3 : index
    %c0_67 = arith.constant 0 : index
    %c0_68 = arith.constant 0 : index
    %128 = vector.load %arg3[%c0_66, %c3, %c0_67, %c0_68] : memref<4x9x2x128xf32, #tpu.memory_space<vmem>>, vector<1x1x2x128xf32>
    %129 = vector.shape_cast %128 : vector<1x1x2x128xf32> to vector<2x128xf32>
    %130 = vector.shape_cast %127 : vector<2x128xf32> to vector<1x1x2x128xf32>
    tpu.vector_store %arg3[%c0_66, %c3, %c0_67, %c0_68], %130 {strides = array<i32>} : memref<4x9x2x128xf32, #tpu.memory_space<vmem>>, vector<1x1x2x128xf32>,
    %cst_69 = arith.constant 0.000000e+00 : f32
    %131 = vector.broadcast %cst_69 : f32 to vector<2x128xf32>
    %c0_70 = arith.constant 0 : index
    %c4 = arith.constant 4 : index
    %c0_71 = arith.constant 0 : index
    %c0_72 = arith.constant 0 : index
    %132 = vector.load %arg3[%c0_70, %c4, %c0_71, %c0_72] : memref<4x9x2x128xf32, #tpu.memory_space<vmem>>, vector<1x1x2x128xf32>
    %133 = vector.shape_cast %132 : vector<1x1x2x128xf32> to vector<2x128xf32>
    %134 = vector.shape_cast %131 : vector<2x128xf32> to vector<1x1x2x128xf32>
    tpu.vector_store %arg3[%c0_70, %c4, %c0_71, %c0_72], %134 {strides = array<i32>} : memref<4x9x2x128xf32, #tpu.memory_space<vmem>>, vector<1x1x2x128xf32>,
    %c127_i32 = arith.constant 127 : i32
    %135 = tpu.dynamic_rotate %71 by %c127_i32 dim 1 : vector<4x128xf32>, i32 -> vector<4x128xf32>
    %136 = vector.extract_strided_slice %135 {offsets = [1, 0], sizes = [2, 128], strides = [1, 1]} : vector<4x128xf32> to vector<2x128xf32>
    %c127_i32_73 = arith.constant 127 : i32
    %137 = vector.broadcast %c127_i32_73 : i32 to vector<2x128xi32>
    %138 = arith.cmpi sge, %32, %137 : vector<2x128xi32>
    %139 = vector.extract_strided_slice %135 {offsets = [2, 0], sizes = [2, 128], strides = [1, 1]} : vector<4x128xf32> to vector<2x128xf32>
    %140 = arith.select %138, %139, %136 : vector<2x128xi1>, vector<2x128xf32>
    %cst_74 = arith.constant 0.000000e+00 : f32
    %141 = vector.broadcast %cst_74 : f32 to vector<2x128xf32>
    %142 = arith.select %53, %141, %140 : vector<2x128xi1>, vector<2x128xf32>
    %143 = arith.cmpf ogt, %142, %72 : vector<2x128xf32>
    %144 = arith.extui %143 : vector<2x128xi1> to vector<2x128xi32>
    %145 = arith.sitofp %144 : vector<2x128xi32> to vector<2x128xf32>
    %c0_75 = arith.constant 0 : index
    %c5 = arith.constant 5 : index
    %c0_76 = arith.constant 0 : index
    %c0_77 = arith.constant 0 : index
    %146 = vector.load %arg3[%c0_75, %c5, %c0_76, %c0_77] : memref<4x9x2x128xf32, #tpu.memory_space<vmem>>, vector<1x1x2x128xf32>
    %147 = vector.shape_cast %146 : vector<1x1x2x128xf32> to vector<2x128xf32>
    %148 = vector.shape_cast %145 : vector<2x128xf32> to vector<1x1x2x128xf32>
    tpu.vector_store %arg3[%c0_75, %c5, %c0_76, %c0_77], %148 {strides = array<i32>} : memref<4x9x2x128xf32, #tpu.memory_space<vmem>>, vector<1x1x2x128xf32>,
    %c113_i32 = arith.constant 113 : i32
    %149 = tpu.dynamic_rotate %71 by %c113_i32 dim 1 : vector<4x128xf32>, i32 -> vector<4x128xf32>
    %150 = vector.extract_strided_slice %149 {offsets = [1, 0], sizes = [2, 128], strides = [1, 1]} : vector<4x128xf32> to vector<2x128xf32>
    %c113_i32_78 = arith.constant 113 : i32
    %151 = vector.broadcast %c113_i32_78 : i32 to vector<2x128xi32>
    %152 = arith.cmpi sge, %32, %151 : vector<2x128xi32>
    %153 = vector.extract_strided_slice %149 {offsets = [2, 0], sizes = [2, 128], strides = [1, 1]} : vector<4x128xf32> to vector<2x128xf32>
    %154 = arith.select %152, %153, %150 : vector<2x128xi1>, vector<2x128xf32>
    %155 = arith.ori %69, %51 : vector<2x128xi1>
    %cst_79 = arith.constant 0.000000e+00 : f32
    %156 = vector.broadcast %cst_79 : f32 to vector<2x128xf32>
    %157 = arith.select %155, %156, %154 : vector<2x128xi1>, vector<2x128xf32>
    %158 = arith.cmpf ogt, %157, %72 : vector<2x128xf32>
    %159 = arith.extui %158 : vector<2x128xi1> to vector<2x128xi32>
    %160 = arith.sitofp %159 : vector<2x128xi32> to vector<2x128xf32>
    %c0_80 = arith.constant 0 : index
    %c6 = arith.constant 6 : index
    %c0_81 = arith.constant 0 : index
    %c0_82 = arith.constant 0 : index
    %161 = vector.load %arg3[%c0_80, %c6, %c0_81, %c0_82] : memref<4x9x2x128xf32, #tpu.memory_space<vmem>>, vector<1x1x2x128xf32>
    %162 = vector.shape_cast %161 : vector<1x1x2x128xf32> to vector<2x128xf32>
    %163 = vector.shape_cast %160 : vector<2x128xf32> to vector<1x1x2x128xf32>
    tpu.vector_store %arg3[%c0_80, %c6, %c0_81, %c0_82], %163 {strides = array<i32>} : memref<4x9x2x128xf32, #tpu.memory_space<vmem>>, vector<1x1x2x128xf32>,
    %c112_i32_83 = arith.constant 112 : i32
    %164 = tpu.dynamic_rotate %71 by %c112_i32_83 dim 1 : vector<4x128xf32>, i32 -> vector<4x128xf32>
    %165 = vector.extract_strided_slice %164 {offsets = [1, 0], sizes = [2, 128], strides = [1, 1]} : vector<4x128xf32> to vector<2x128xf32>
    %c112_i32_84 = arith.constant 112 : i32
    %166 = vector.broadcast %c112_i32_84 : i32 to vector<2x128xi32>
    %167 = arith.cmpi sge, %32, %166 : vector<2x128xi32>
    %168 = vector.extract_strided_slice %164 {offsets = [2, 0], sizes = [2, 128], strides = [1, 1]} : vector<4x128xf32> to vector<2x128xf32>
    %169 = arith.select %167, %168, %165 : vector<2x128xi1>, vector<2x128xf32>
    %cst_85 = arith.constant 0.000000e+00 : f32
    %170 = vector.broadcast %cst_85 : f32 to vector<2x128xf32>
    %171 = arith.select %69, %170, %169 : vector<2x128xi1>, vector<2x128xf32>
    %172 = arith.cmpf ogt, %171, %72 : vector<2x128xf32>
    %173 = arith.extui %172 : vector<2x128xi1> to vector<2x128xi32>
    %174 = arith.sitofp %173 : vector<2x128xi32> to vector<2x128xf32>
    %c0_86 = arith.constant 0 : index
    %c7 = arith.constant 7 : index
    %c0_87 = arith.constant 0 : index
    %c0_88 = arith.constant 0 : index
    %175 = vector.load %arg3[%c0_86, %c7, %c0_87, %c0_88] : memref<4x9x2x128xf32, #tpu.memory_space<vmem>>, vector<1x1x2x128xf32>
    %176 = vector.shape_cast %175 : vector<1x1x2x128xf32> to vector<2x128xf32>
    %177 = vector.shape_cast %174 : vector<2x128xf32> to vector<1x1x2x128xf32>
    tpu.vector_store %arg3[%c0_86, %c7, %c0_87, %c0_88], %177 {strides = array<i32>} : memref<4x9x2x128xf32, #tpu.memory_space<vmem>>, vector<1x1x2x128xf32>,
    %c111_i32 = arith.constant 111 : i32
    %178 = tpu.dynamic_rotate %71 by %c111_i32 dim 1 : vector<4x128xf32>, i32 -> vector<4x128xf32>
    %179 = vector.extract_strided_slice %178 {offsets = [1, 0], sizes = [2, 128], strides = [1, 1]} : vector<4x128xf32> to vector<2x128xf32>
    %c111_i32_89 = arith.constant 111 : i32
    %180 = vector.broadcast %c111_i32_89 : i32 to vector<2x128xi32>
    %181 = arith.cmpi sge, %32, %180 : vector<2x128xi32>
    %182 = vector.extract_strided_slice %178 {offsets = [2, 0], sizes = [2, 128], strides = [1, 1]} : vector<4x128xf32> to vector<2x128xf32>
    %183 = arith.select %181, %182, %179 : vector<2x128xi1>, vector<2x128xf32>
    %184 = arith.ori %69, %53 : vector<2x128xi1>
    %cst_90 = arith.constant 0.000000e+00 : f32
    %185 = vector.broadcast %cst_90 : f32 to vector<2x128xf32>
    %186 = arith.select %184, %185, %183 : vector<2x128xi1>, vector<2x128xf32>
    %187 = arith.cmpf ogt, %186, %72 : vector<2x128xf32>
    %188 = arith.extui %187 : vector<2x128xi1> to vector<2x128xi32>
    %189 = arith.sitofp %188 : vector<2x128xi32> to vector<2x128xf32>
    %c0_91 = arith.constant 0 : index
    %c8 = arith.constant 8 : index
    %c0_92 = arith.constant 0 : index
    %c0_93 = arith.constant 0 : index
    %190 = vector.load %arg3[%c0_91, %c8, %c0_92, %c0_93] : memref<4x9x2x128xf32, #tpu.memory_space<vmem>>, vector<1x1x2x128xf32>
    %191 = vector.shape_cast %190 : vector<1x1x2x128xf32> to vector<2x128xf32>
    %192 = vector.shape_cast %189 : vector<2x128xf32> to vector<1x1x2x128xf32>
    tpu.vector_store %arg3[%c0_91, %c8, %c0_92, %c0_93], %192 {strides = array<i32>} : memref<4x9x2x128xf32, #tpu.memory_space<vmem>>, vector<1x1x2x128xf32>,
    %c1_94 = arith.constant 1 : index
    %c0_95 = arith.constant 0 : index
    %c0_96 = arith.constant 0 : index
    %193 = vector.load %arg4[%c1_94, %c0_95, %c0_96] : memref<4x4x128xf32, #tpu.memory_space<vmem>>, vector<1x4x128xf32>
    %194 = vector.shape_cast %193 : vector<1x4x128xf32> to vector<4x128xf32>
    %195 = vector.extract_strided_slice %194 {offsets = [1, 0], sizes = [2, 128], strides = [1, 1]} : vector<4x128xf32> to vector<2x128xf32>
    %c17_i32_97 = arith.constant 17 : i32
    %196 = tpu.dynamic_rotate %194 by %c17_i32_97 dim 1 : vector<4x128xf32>, i32 -> vector<4x128xf32>
    %197 = vector.extract_strided_slice %196 {offsets = [1, 0], sizes = [2, 128], strides = [1, 1]} : vector<4x128xf32> to vector<2x128xf32>
    %c17_i32_98 = arith.constant 17 : i32
    %198 = vector.broadcast %c17_i32_98 : i32 to vector<2x128xi32>
    %199 = arith.cmpi slt, %32, %198 : vector<2x128xi32>
    %200 = vector.extract_strided_slice %196 {offsets = [0, 0], sizes = [2, 128], strides = [1, 1]} : vector<4x128xf32> to vector<2x128xf32>
    %201 = arith.select %199, %200, %197 : vector<2x128xi1>, vector<2x128xf32>
    %202 = arith.ori %61, %51 : vector<2x128xi1>
    %cst_99 = arith.constant 0.000000e+00 : f32
    %203 = vector.broadcast %cst_99 : f32 to vector<2x128xf32>
    %204 = arith.select %202, %203, %201 : vector<2x128xi1>, vector<2x128xf32>
    %205 = arith.cmpf ogt, %204, %195 : vector<2x128xf32>
    %206 = arith.extui %205 : vector<2x128xi1> to vector<2x128xi32>
    %207 = arith.sitofp %206 : vector<2x128xi32> to vector<2x128xf32>
    %c1_100 = arith.constant 1 : index
    %c0_101 = arith.constant 0 : index
    %c0_102 = arith.constant 0 : index
    %c0_103 = arith.constant 0 : index
    %208 = vector.load %arg3[%c1_100, %c0_101, %c0_102, %c0_103] : memref<4x9x2x128xf32, #tpu.memory_space<vmem>>, vector<1x1x2x128xf32>
    %209 = vector.shape_cast %208 : vector<1x1x2x128xf32> to vector<2x128xf32>
    %210 = vector.shape_cast %207 : vector<2x128xf32> to vector<1x1x2x128xf32>
    tpu.vector_store %arg3[%c1_100, %c0_101, %c0_102, %c0_103], %210 {strides = array<i32>} : memref<4x9x2x128xf32, #tpu.memory_space<vmem>>, vector<1x1x2x128xf32>,
    %c16_i32_104 = arith.constant 16 : i32
    %211 = tpu.dynamic_rotate %194 by %c16_i32_104 dim 1 : vector<4x128xf32>, i32 -> vector<4x128xf32>
    %212 = vector.extract_strided_slice %211 {offsets = [1, 0], sizes = [2, 128], strides = [1, 1]} : vector<4x128xf32> to vector<2x128xf32>
    %c16_i32_105 = arith.constant 16 : i32
    %213 = vector.broadcast %c16_i32_105 : i32 to vector<2x128xi32>
    %214 = arith.cmpi slt, %32, %213 : vector<2x128xi32>
    %215 = vector.extract_strided_slice %211 {offsets = [0, 0], sizes = [2, 128], strides = [1, 1]} : vector<4x128xf32> to vector<2x128xf32>
    %216 = arith.select %214, %215, %212 : vector<2x128xi1>, vector<2x128xf32>
    %cst_106 = arith.constant 0.000000e+00 : f32
    %217 = vector.broadcast %cst_106 : f32 to vector<2x128xf32>
    %218 = arith.select %61, %217, %216 : vector<2x128xi1>, vector<2x128xf32>
    %219 = arith.cmpf ogt, %218, %195 : vector<2x128xf32>
    %220 = arith.extui %219 : vector<2x128xi1> to vector<2x128xi32>
    %221 = arith.sitofp %220 : vector<2x128xi32> to vector<2x128xf32>
    %c1_107 = arith.constant 1 : index
    %c1_108 = arith.constant 1 : index
    %c0_109 = arith.constant 0 : index
    %c0_110 = arith.constant 0 : index
    %222 = vector.load %arg3[%c1_107, %c1_108, %c0_109, %c0_110] : memref<4x9x2x128xf32, #tpu.memory_space<vmem>>, vector<1x1x2x128xf32>
    %223 = vector.shape_cast %222 : vector<1x1x2x128xf32> to vector<2x128xf32>
    %224 = vector.shape_cast %221 : vector<2x128xf32> to vector<1x1x2x128xf32>
    tpu.vector_store %arg3[%c1_107, %c1_108, %c0_109, %c0_110], %224 {strides = array<i32>} : memref<4x9x2x128xf32, #tpu.memory_space<vmem>>, vector<1x1x2x128xf32>,
    %c15_i32_111 = arith.constant 15 : i32
    %225 = tpu.dynamic_rotate %194 by %c15_i32_111 dim 1 : vector<4x128xf32>, i32 -> vector<4x128xf32>
    %226 = vector.extract_strided_slice %225 {offsets = [1, 0], sizes = [2, 128], strides = [1, 1]} : vector<4x128xf32> to vector<2x128xf32>
    %c15_i32_112 = arith.constant 15 : i32
    %227 = vector.broadcast %c15_i32_112 : i32 to vector<2x128xi32>
    %228 = arith.cmpi slt, %32, %227 : vector<2x128xi32>
    %229 = vector.extract_strided_slice %225 {offsets = [0, 0], sizes = [2, 128], strides = [1, 1]} : vector<4x128xf32> to vector<2x128xf32>
    %230 = arith.select %228, %229, %226 : vector<2x128xi1>, vector<2x128xf32>
    %231 = arith.ori %61, %53 : vector<2x128xi1>
    %cst_113 = arith.constant 0.000000e+00 : f32
    %232 = vector.broadcast %cst_113 : f32 to vector<2x128xf32>
    %233 = arith.select %231, %232, %230 : vector<2x128xi1>, vector<2x128xf32>
    %234 = arith.cmpf ogt, %233, %195 : vector<2x128xf32>
    %235 = arith.extui %234 : vector<2x128xi1> to vector<2x128xi32>
    %236 = arith.sitofp %235 : vector<2x128xi32> to vector<2x128xf32>
    %c1_114 = arith.constant 1 : index
    %c2_115 = arith.constant 2 : index
    %c0_116 = arith.constant 0 : index
    %c0_117 = arith.constant 0 : index
    %237 = vector.load %arg3[%c1_114, %c2_115, %c0_116, %c0_117] : memref<4x9x2x128xf32, #tpu.memory_space<vmem>>, vector<1x1x2x128xf32>
    %238 = vector.shape_cast %237 : vector<1x1x2x128xf32> to vector<2x128xf32>
    %239 = vector.shape_cast %236 : vector<2x128xf32> to vector<1x1x2x128xf32>
    tpu.vector_store %arg3[%c1_114, %c2_115, %c0_116, %c0_117], %239 {strides = array<i32>} : memref<4x9x2x128xf32, #tpu.memory_space<vmem>>, vector<1x1x2x128xf32>,
    %c1_i32_118 = arith.constant 1 : i32
    %240 = tpu.dynamic_rotate %194 by %c1_i32_118 dim 1 : vector<4x128xf32>, i32 -> vector<4x128xf32>
    %241 = vector.extract_strided_slice %240 {offsets = [1, 0], sizes = [2, 128], strides = [1, 1]} : vector<4x128xf32> to vector<2x128xf32>
    %c1_i32_119 = arith.constant 1 : i32
    %242 = vector.broadcast %c1_i32_119 : i32 to vector<2x128xi32>
    %243 = arith.cmpi slt, %32, %242 : vector<2x128xi32>
    %244 = vector.extract_strided_slice %240 {offsets = [0, 0], sizes = [2, 128], strides = [1, 1]} : vector<4x128xf32> to vector<2x128xf32>
    %245 = arith.select %243, %244, %241 : vector<2x128xi1>, vector<2x128xf32>
    %cst_120 = arith.constant 0.000000e+00 : f32
    %246 = vector.broadcast %cst_120 : f32 to vector<2x128xf32>
    %247 = arith.select %51, %246, %245 : vector<2x128xi1>, vector<2x128xf32>
    %248 = arith.cmpf ogt, %247, %195 : vector<2x128xf32>
    %249 = arith.extui %248 : vector<2x128xi1> to vector<2x128xi32>
    %250 = arith.sitofp %249 : vector<2x128xi32> to vector<2x128xf32>
    %c1_121 = arith.constant 1 : index
    %c3_122 = arith.constant 3 : index
    %c0_123 = arith.constant 0 : index
    %c0_124 = arith.constant 0 : index
    %251 = vector.load %arg3[%c1_121, %c3_122, %c0_123, %c0_124] : memref<4x9x2x128xf32, #tpu.memory_space<vmem>>, vector<1x1x2x128xf32>
    %252 = vector.shape_cast %251 : vector<1x1x2x128xf32> to vector<2x128xf32>
    %253 = vector.shape_cast %250 : vector<2x128xf32> to vector<1x1x2x128xf32>
    tpu.vector_store %arg3[%c1_121, %c3_122, %c0_123, %c0_124], %253 {strides = array<i32>} : memref<4x9x2x128xf32, #tpu.memory_space<vmem>>, vector<1x1x2x128xf32>,
    %cst_125 = arith.constant 0.000000e+00 : f32
    %254 = vector.broadcast %cst_125 : f32 to vector<2x128xf32>
    %c1_126 = arith.constant 1 : index
    %c4_127 = arith.constant 4 : index
    %c0_128 = arith.constant 0 : index
    %c0_129 = arith.constant 0 : index
    %255 = vector.load %arg3[%c1_126, %c4_127, %c0_128, %c0_129] : memref<4x9x2x128xf32, #tpu.memory_space<vmem>>, vector<1x1x2x128xf32>
    %256 = vector.shape_cast %255 : vector<1x1x2x128xf32> to vector<2x128xf32>
    %257 = vector.shape_cast %254 : vector<2x128xf32> to vector<1x1x2x128xf32>
    tpu.vector_store %arg3[%c1_126, %c4_127, %c0_128, %c0_129], %257 {strides = array<i32>} : memref<4x9x2x128xf32, #tpu.memory_space<vmem>>, vector<1x1x2x128xf32>,
    %c127_i32_130 = arith.constant 127 : i32
    %258 = tpu.dynamic_rotate %194 by %c127_i32_130 dim 1 : vector<4x128xf32>, i32 -> vector<4x128xf32>
    %259 = vector.extract_strided_slice %258 {offsets = [1, 0], sizes = [2, 128], strides = [1, 1]} : vector<4x128xf32> to vector<2x128xf32>
    %c127_i32_131 = arith.constant 127 : i32
    %260 = vector.broadcast %c127_i32_131 : i32 to vector<2x128xi32>
    %261 = arith.cmpi sge, %32, %260 : vector<2x128xi32>
    %262 = vector.extract_strided_slice %258 {offsets = [2, 0], sizes = [2, 128], strides = [1, 1]} : vector<4x128xf32> to vector<2x128xf32>
    %263 = arith.select %261, %262, %259 : vector<2x128xi1>, vector<2x128xf32>
    %cst_132 = arith.constant 0.000000e+00 : f32
    %264 = vector.broadcast %cst_132 : f32 to vector<2x128xf32>
    %265 = arith.select %53, %264, %263 : vector<2x128xi1>, vector<2x128xf32>
    %266 = arith.cmpf ogt, %265, %195 : vector<2x128xf32>
    %267 = arith.extui %266 : vector<2x128xi1> to vector<2x128xi32>
    %268 = arith.sitofp %267 : vector<2x128xi32> to vector<2x128xf32>
    %c1_133 = arith.constant 1 : index
    %c5_134 = arith.constant 5 : index
    %c0_135 = arith.constant 0 : index
    %c0_136 = arith.constant 0 : index
    %269 = vector.load %arg3[%c1_133, %c5_134, %c0_135, %c0_136] : memref<4x9x2x128xf32, #tpu.memory_space<vmem>>, vector<1x1x2x128xf32>
    %270 = vector.shape_cast %269 : vector<1x1x2x128xf32> to vector<2x128xf32>
    %271 = vector.shape_cast %268 : vector<2x128xf32> to vector<1x1x2x128xf32>
    tpu.vector_store %arg3[%c1_133, %c5_134, %c0_135, %c0_136], %271 {strides = array<i32>} : memref<4x9x2x128xf32, #tpu.memory_space<vmem>>, vector<1x1x2x128xf32>,
    %c113_i32_137 = arith.constant 113 : i32
    %272 = tpu.dynamic_rotate %194 by %c113_i32_137 dim 1 : vector<4x128xf32>, i32 -> vector<4x128xf32>
    %273 = vector.extract_strided_slice %272 {offsets = [1, 0], sizes = [2, 128], strides = [1, 1]} : vector<4x128xf32> to vector<2x128xf32>
    %c113_i32_138 = arith.constant 113 : i32
    %274 = vector.broadcast %c113_i32_138 : i32 to vector<2x128xi32>
    %275 = arith.cmpi sge, %32, %274 : vector<2x128xi32>
    %276 = vector.extract_strided_slice %272 {offsets = [2, 0], sizes = [2, 128], strides = [1, 1]} : vector<4x128xf32> to vector<2x128xf32>
    %277 = arith.select %275, %276, %273 : vector<2x128xi1>, vector<2x128xf32>
    %278 = arith.ori %69, %51 : vector<2x128xi1>
    %cst_139 = arith.constant 0.000000e+00 : f32
    %279 = vector.broadcast %cst_139 : f32 to vector<2x128xf32>
    %280 = arith.select %278, %279, %277 : vector<2x128xi1>, vector<2x128xf32>
    %281 = arith.cmpf ogt, %280, %195 : vector<2x128xf32>
    %282 = arith.extui %281 : vector<2x128xi1> to vector<2x128xi32>
    %283 = arith.sitofp %282 : vector<2x128xi32> to vector<2x128xf32>
    %c1_140 = arith.constant 1 : index
    %c6_141 = arith.constant 6 : index
    %c0_142 = arith.constant 0 : index
    %c0_143 = arith.constant 0 : index
    %284 = vector.load %arg3[%c1_140, %c6_141, %c0_142, %c0_143] : memref<4x9x2x128xf32, #tpu.memory_space<vmem>>, vector<1x1x2x128xf32>
    %285 = vector.shape_cast %284 : vector<1x1x2x128xf32> to vector<2x128xf32>
    %286 = vector.shape_cast %283 : vector<2x128xf32> to vector<1x1x2x128xf32>
    tpu.vector_store %arg3[%c1_140, %c6_141, %c0_142, %c0_143], %286 {strides = array<i32>} : memref<4x9x2x128xf32, #tpu.memory_space<vmem>>, vector<1x1x2x128xf32>,
    %c112_i32_144 = arith.constant 112 : i32
    %287 = tpu.dynamic_rotate %194 by %c112_i32_144 dim 1 : vector<4x128xf32>, i32 -> vector<4x128xf32>
    %288 = vector.extract_strided_slice %287 {offsets = [1, 0], sizes = [2, 128], strides = [1, 1]} : vector<4x128xf32> to vector<2x128xf32>
    %c112_i32_145 = arith.constant 112 : i32
    %289 = vector.broadcast %c112_i32_145 : i32 to vector<2x128xi32>
    %290 = arith.cmpi sge, %32, %289 : vector<2x128xi32>
    %291 = vector.extract_strided_slice %287 {offsets = [2, 0], sizes = [2, 128], strides = [1, 1]} : vector<4x128xf32> to vector<2x128xf32>
    %292 = arith.select %290, %291, %288 : vector<2x128xi1>, vector<2x128xf32>
    %cst_146 = arith.constant 0.000000e+00 : f32
    %293 = vector.broadcast %cst_146 : f32 to vector<2x128xf32>
    %294 = arith.select %69, %293, %292 : vector<2x128xi1>, vector<2x128xf32>
    %295 = arith.cmpf ogt, %294, %195 : vector<2x128xf32>
    %296 = arith.extui %295 : vector<2x128xi1> to vector<2x128xi32>
    %297 = arith.sitofp %296 : vector<2x128xi32> to vector<2x128xf32>
    %c1_147 = arith.constant 1 : index
    %c7_148 = arith.constant 7 : index
    %c0_149 = arith.constant 0 : index
    %c0_150 = arith.constant 0 : index
    %298 = vector.load %arg3[%c1_147, %c7_148, %c0_149, %c0_150] : memref<4x9x2x128xf32, #tpu.memory_space<vmem>>, vector<1x1x2x128xf32>
    %299 = vector.shape_cast %298 : vector<1x1x2x128xf32> to vector<2x128xf32>
    %300 = vector.shape_cast %297 : vector<2x128xf32> to vector<1x1x2x128xf32>
    tpu.vector_store %arg3[%c1_147, %c7_148, %c0_149, %c0_150], %300 {strides = array<i32>} : memref<4x9x2x128xf32, #tpu.memory_space<vmem>>, vector<1x1x2x128xf32>,
    %c111_i32_151 = arith.constant 111 : i32
    %301 = tpu.dynamic_rotate %194 by %c111_i32_151 dim 1 : vector<4x128xf32>, i32 -> vector<4x128xf32>
    %302 = vector.extract_strided_slice %301 {offsets = [1, 0], sizes = [2, 128], strides = [1, 1]} : vector<4x128xf32> to vector<2x128xf32>
    %c111_i32_152 = arith.constant 111 : i32
    %303 = vector.broadcast %c111_i32_152 : i32 to vector<2x128xi32>
    %304 = arith.cmpi sge, %32, %303 : vector<2x128xi32>
    %305 = vector.extract_strided_slice %301 {offsets = [2, 0], sizes = [2, 128], strides = [1, 1]} : vector<4x128xf32> to vector<2x128xf32>
    %306 = arith.select %304, %305, %302 : vector<2x128xi1>, vector<2x128xf32>
    %307 = arith.ori %69, %53 : vector<2x128xi1>
    %cst_153 = arith.constant 0.000000e+00 : f32
    %308 = vector.broadcast %cst_153 : f32 to vector<2x128xf32>
    %309 = arith.select %307, %308, %306 : vector<2x128xi1>, vector<2x128xf32>
    %310 = arith.cmpf ogt, %309, %195 : vector<2x128xf32>
    %311 = arith.extui %310 : vector<2x128xi1> to vector<2x128xi32>
    %312 = arith.sitofp %311 : vector<2x128xi32> to vector<2x128xf32>
    %c1_154 = arith.constant 1 : index
    %c8_155 = arith.constant 8 : index
    %c0_156 = arith.constant 0 : index
    %c0_157 = arith.constant 0 : index
    %313 = vector.load %arg3[%c1_154, %c8_155, %c0_156, %c0_157] : memref<4x9x2x128xf32, #tpu.memory_space<vmem>>, vector<1x1x2x128xf32>
    %314 = vector.shape_cast %313 : vector<1x1x2x128xf32> to vector<2x128xf32>
    %315 = vector.shape_cast %312 : vector<2x128xf32> to vector<1x1x2x128xf32>
    tpu.vector_store %arg3[%c1_154, %c8_155, %c0_156, %c0_157], %315 {strides = array<i32>} : memref<4x9x2x128xf32, #tpu.memory_space<vmem>>, vector<1x1x2x128xf32>,
    %c2_158 = arith.constant 2 : index
    %c0_159 = arith.constant 0 : index
    %c0_160 = arith.constant 0 : index
    %316 = vector.load %arg4[%c2_158, %c0_159, %c0_160] : memref<4x4x128xf32, #tpu.memory_space<vmem>>, vector<1x4x128xf32>
    %317 = vector.shape_cast %316 : vector<1x4x128xf32> to vector<4x128xf32>
    %318 = vector.extract_strided_slice %317 {offsets = [1, 0], sizes = [2, 128], strides = [1, 1]} : vector<4x128xf32> to vector<2x128xf32>
    %c17_i32_161 = arith.constant 17 : i32
    %319 = tpu.dynamic_rotate %317 by %c17_i32_161 dim 1 : vector<4x128xf32>, i32 -> vector<4x128xf32>
    %320 = vector.extract_strided_slice %319 {offsets = [1, 0], sizes = [2, 128], strides = [1, 1]} : vector<4x128xf32> to vector<2x128xf32>
    %c17_i32_162 = arith.constant 17 : i32
    %321 = vector.broadcast %c17_i32_162 : i32 to vector<2x128xi32>
    %322 = arith.cmpi slt, %32, %321 : vector<2x128xi32>
    %323 = vector.extract_strided_slice %319 {offsets = [0, 0], sizes = [2, 128], strides = [1, 1]} : vector<4x128xf32> to vector<2x128xf32>
    %324 = arith.select %322, %323, %320 : vector<2x128xi1>, vector<2x128xf32>
    %325 = arith.ori %61, %51 : vector<2x128xi1>
    %cst_163 = arith.constant 0.000000e+00 : f32
    %326 = vector.broadcast %cst_163 : f32 to vector<2x128xf32>
    %327 = arith.select %325, %326, %324 : vector<2x128xi1>, vector<2x128xf32>
    %328 = arith.cmpf ogt, %327, %318 : vector<2x128xf32>
    %329 = arith.extui %328 : vector<2x128xi1> to vector<2x128xi32>
    %330 = arith.sitofp %329 : vector<2x128xi32> to vector<2x128xf32>
    %c2_164 = arith.constant 2 : index
    %c0_165 = arith.constant 0 : index
    %c0_166 = arith.constant 0 : index
    %c0_167 = arith.constant 0 : index
    %331 = vector.load %arg3[%c2_164, %c0_165, %c0_166, %c0_167] : memref<4x9x2x128xf32, #tpu.memory_space<vmem>>, vector<1x1x2x128xf32>
    %332 = vector.shape_cast %331 : vector<1x1x2x128xf32> to vector<2x128xf32>
    %333 = vector.shape_cast %330 : vector<2x128xf32> to vector<1x1x2x128xf32>
    tpu.vector_store %arg3[%c2_164, %c0_165, %c0_166, %c0_167], %333 {strides = array<i32>} : memref<4x9x2x128xf32, #tpu.memory_space<vmem>>, vector<1x1x2x128xf32>,
    %c16_i32_168 = arith.constant 16 : i32
    %334 = tpu.dynamic_rotate %317 by %c16_i32_168 dim 1 : vector<4x128xf32>, i32 -> vector<4x128xf32>
    %335 = vector.extract_strided_slice %334 {offsets = [1, 0], sizes = [2, 128], strides = [1, 1]} : vector<4x128xf32> to vector<2x128xf32>
    %c16_i32_169 = arith.constant 16 : i32
    %336 = vector.broadcast %c16_i32_169 : i32 to vector<2x128xi32>
    %337 = arith.cmpi slt, %32, %336 : vector<2x128xi32>
    %338 = vector.extract_strided_slice %334 {offsets = [0, 0], sizes = [2, 128], strides = [1, 1]} : vector<4x128xf32> to vector<2x128xf32>
    %339 = arith.select %337, %338, %335 : vector<2x128xi1>, vector<2x128xf32>
    %cst_170 = arith.constant 0.000000e+00 : f32
    %340 = vector.broadcast %cst_170 : f32 to vector<2x128xf32>
    %341 = arith.select %61, %340, %339 : vector<2x128xi1>, vector<2x128xf32>
    %342 = arith.cmpf ogt, %341, %318 : vector<2x128xf32>
    %343 = arith.extui %342 : vector<2x128xi1> to vector<2x128xi32>
    %344 = arith.sitofp %343 : vector<2x128xi32> to vector<2x128xf32>
    %c2_171 = arith.constant 2 : index
    %c1_172 = arith.constant 1 : index
    %c0_173 = arith.constant 0 : index
    %c0_174 = arith.constant 0 : index
    %345 = vector.load %arg3[%c2_171, %c1_172, %c0_173, %c0_174] : memref<4x9x2x128xf32, #tpu.memory_space<vmem>>, vector<1x1x2x128xf32>
    %346 = vector.shape_cast %345 : vector<1x1x2x128xf32> to vector<2x128xf32>
    %347 = vector.shape_cast %344 : vector<2x128xf32> to vector<1x1x2x128xf32>
    tpu.vector_store %arg3[%c2_171, %c1_172, %c0_173, %c0_174], %347 {strides = array<i32>} : memref<4x9x2x128xf32, #tpu.memory_space<vmem>>, vector<1x1x2x128xf32>,
    %c15_i32_175 = arith.constant 15 : i32
    %348 = tpu.dynamic_rotate %317 by %c15_i32_175 dim 1 : vector<4x128xf32>, i32 -> vector<4x128xf32>
    %349 = vector.extract_strided_slice %348 {offsets = [1, 0], sizes = [2, 128], strides = [1, 1]} : vector<4x128xf32> to vector<2x128xf32>
    %c15_i32_176 = arith.constant 15 : i32
    %350 = vector.broadcast %c15_i32_176 : i32 to vector<2x128xi32>
    %351 = arith.cmpi slt, %32, %350 : vector<2x128xi32>
    %352 = vector.extract_strided_slice %348 {offsets = [0, 0], sizes = [2, 128], strides = [1, 1]} : vector<4x128xf32> to vector<2x128xf32>
    %353 = arith.select %351, %352, %349 : vector<2x128xi1>, vector<2x128xf32>
    %354 = arith.ori %61, %53 : vector<2x128xi1>
    %cst_177 = arith.constant 0.000000e+00 : f32
    %355 = vector.broadcast %cst_177 : f32 to vector<2x128xf32>
    %356 = arith.select %354, %355, %353 : vector<2x128xi1>, vector<2x128xf32>
    %357 = arith.cmpf ogt, %356, %318 : vector<2x128xf32>
    %358 = arith.extui %357 : vector<2x128xi1> to vector<2x128xi32>
    %359 = arith.sitofp %358 : vector<2x128xi32> to vector<2x128xf32>
    %c2_178 = arith.constant 2 : index
    %c2_179 = arith.constant 2 : index
    %c0_180 = arith.constant 0 : index
    %c0_181 = arith.constant 0 : index
    %360 = vector.load %arg3[%c2_178, %c2_179, %c0_180, %c0_181] : memref<4x9x2x128xf32, #tpu.memory_space<vmem>>, vector<1x1x2x128xf32>
    %361 = vector.shape_cast %360 : vector<1x1x2x128xf32> to vector<2x128xf32>
    %362 = vector.shape_cast %359 : vector<2x128xf32> to vector<1x1x2x128xf32>
    tpu.vector_store %arg3[%c2_178, %c2_179, %c0_180, %c0_181], %362 {strides = array<i32>} : memref<4x9x2x128xf32, #tpu.memory_space<vmem>>, vector<1x1x2x128xf32>,
    %c1_i32_182 = arith.constant 1 : i32
    %363 = tpu.dynamic_rotate %317 by %c1_i32_182 dim 1 : vector<4x128xf32>, i32 -> vector<4x128xf32>
    %364 = vector.extract_strided_slice %363 {offsets = [1, 0], sizes = [2, 128], strides = [1, 1]} : vector<4x128xf32> to vector<2x128xf32>
    %c1_i32_183 = arith.constant 1 : i32
    %365 = vector.broadcast %c1_i32_183 : i32 to vector<2x128xi32>
    %366 = arith.cmpi slt, %32, %365 : vector<2x128xi32>
    %367 = vector.extract_strided_slice %363 {offsets = [0, 0], sizes = [2, 128], strides = [1, 1]} : vector<4x128xf32> to vector<2x128xf32>
    %368 = arith.select %366, %367, %364 : vector<2x128xi1>, vector<2x128xf32>
    %cst_184 = arith.constant 0.000000e+00 : f32
    %369 = vector.broadcast %cst_184 : f32 to vector<2x128xf32>
    %370 = arith.select %51, %369, %368 : vector<2x128xi1>, vector<2x128xf32>
    %371 = arith.cmpf ogt, %370, %318 : vector<2x128xf32>
    %372 = arith.extui %371 : vector<2x128xi1> to vector<2x128xi32>
    %373 = arith.sitofp %372 : vector<2x128xi32> to vector<2x128xf32>
    %c2_185 = arith.constant 2 : index
    %c3_186 = arith.constant 3 : index
    %c0_187 = arith.constant 0 : index
    %c0_188 = arith.constant 0 : index
    %374 = vector.load %arg3[%c2_185, %c3_186, %c0_187, %c0_188] : memref<4x9x2x128xf32, #tpu.memory_space<vmem>>, vector<1x1x2x128xf32>
    %375 = vector.shape_cast %374 : vector<1x1x2x128xf32> to vector<2x128xf32>
    %376 = vector.shape_cast %373 : vector<2x128xf32> to vector<1x1x2x128xf32>
    tpu.vector_store %arg3[%c2_185, %c3_186, %c0_187, %c0_188], %376 {strides = array<i32>} : memref<4x9x2x128xf32, #tpu.memory_space<vmem>>, vector<1x1x2x128xf32>,
    %cst_189 = arith.constant 0.000000e+00 : f32
    %377 = vector.broadcast %cst_189 : f32 to vector<2x128xf32>
    %c2_190 = arith.constant 2 : index
    %c4_191 = arith.constant 4 : index
    %c0_192 = arith.constant 0 : index
    %c0_193 = arith.constant 0 : index
    %378 = vector.load %arg3[%c2_190, %c4_191, %c0_192, %c0_193] : memref<4x9x2x128xf32, #tpu.memory_space<vmem>>, vector<1x1x2x128xf32>
    %379 = vector.shape_cast %378 : vector<1x1x2x128xf32> to vector<2x128xf32>
    %380 = vector.shape_cast %377 : vector<2x128xf32> to vector<1x1x2x128xf32>
    tpu.vector_store %arg3[%c2_190, %c4_191, %c0_192, %c0_193], %380 {strides = array<i32>} : memref<4x9x2x128xf32, #tpu.memory_space<vmem>>, vector<1x1x2x128xf32>,
    %c127_i32_194 = arith.constant 127 : i32
    %381 = tpu.dynamic_rotate %317 by %c127_i32_194 dim 1 : vector<4x128xf32>, i32 -> vector<4x128xf32>
    %382 = vector.extract_strided_slice %381 {offsets = [1, 0], sizes = [2, 128], strides = [1, 1]} : vector<4x128xf32> to vector<2x128xf32>
    %c127_i32_195 = arith.constant 127 : i32
    %383 = vector.broadcast %c127_i32_195 : i32 to vector<2x128xi32>
    %384 = arith.cmpi sge, %32, %383 : vector<2x128xi32>
    %385 = vector.extract_strided_slice %381 {offsets = [2, 0], sizes = [2, 128], strides = [1, 1]} : vector<4x128xf32> to vector<2x128xf32>
    %386 = arith.select %384, %385, %382 : vector<2x128xi1>, vector<2x128xf32>
    %cst_196 = arith.constant 0.000000e+00 : f32
    %387 = vector.broadcast %cst_196 : f32 to vector<2x128xf32>
    %388 = arith.select %53, %387, %386 : vector<2x128xi1>, vector<2x128xf32>
    %389 = arith.cmpf ogt, %388, %318 : vector<2x128xf32>
    %390 = arith.extui %389 : vector<2x128xi1> to vector<2x128xi32>
    %391 = arith.sitofp %390 : vector<2x128xi32> to vector<2x128xf32>
    %c2_197 = arith.constant 2 : index
    %c5_198 = arith.constant 5 : index
    %c0_199 = arith.constant 0 : index
    %c0_200 = arith.constant 0 : index
    %392 = vector.load %arg3[%c2_197, %c5_198, %c0_199, %c0_200] : memref<4x9x2x128xf32, #tpu.memory_space<vmem>>, vector<1x1x2x128xf32>
    %393 = vector.shape_cast %392 : vector<1x1x2x128xf32> to vector<2x128xf32>
    %394 = vector.shape_cast %391 : vector<2x128xf32> to vector<1x1x2x128xf32>
    tpu.vector_store %arg3[%c2_197, %c5_198, %c0_199, %c0_200], %394 {strides = array<i32>} : memref<4x9x2x128xf32, #tpu.memory_space<vmem>>, vector<1x1x2x128xf32>,
    %c113_i32_201 = arith.constant 113 : i32
    %395 = tpu.dynamic_rotate %317 by %c113_i32_201 dim 1 : vector<4x128xf32>, i32 -> vector<4x128xf32>
    %396 = vector.extract_strided_slice %395 {offsets = [1, 0], sizes = [2, 128], strides = [1, 1]} : vector<4x128xf32> to vector<2x128xf32>
    %c113_i32_202 = arith.constant 113 : i32
    %397 = vector.broadcast %c113_i32_202 : i32 to vector<2x128xi32>
    %398 = arith.cmpi sge, %32, %397 : vector<2x128xi32>
    %399 = vector.extract_strided_slice %395 {offsets = [2, 0], sizes = [2, 128], strides = [1, 1]} : vector<4x128xf32> to vector<2x128xf32>
    %400 = arith.select %398, %399, %396 : vector<2x128xi1>, vector<2x128xf32>
    %401 = arith.ori %69, %51 : vector<2x128xi1>
    %cst_203 = arith.constant 0.000000e+00 : f32
    %402 = vector.broadcast %cst_203 : f32 to vector<2x128xf32>
    %403 = arith.select %401, %402, %400 : vector<2x128xi1>, vector<2x128xf32>
    %404 = arith.cmpf ogt, %403, %318 : vector<2x128xf32>
    %405 = arith.extui %404 : vector<2x128xi1> to vector<2x128xi32>
    %406 = arith.sitofp %405 : vector<2x128xi32> to vector<2x128xf32>
    %c2_204 = arith.constant 2 : index
    %c6_205 = arith.constant 6 : index
    %c0_206 = arith.constant 0 : index
    %c0_207 = arith.constant 0 : index
    %407 = vector.load %arg3[%c2_204, %c6_205, %c0_206, %c0_207] : memref<4x9x2x128xf32, #tpu.memory_space<vmem>>, vector<1x1x2x128xf32>
    %408 = vector.shape_cast %407 : vector<1x1x2x128xf32> to vector<2x128xf32>
    %409 = vector.shape_cast %406 : vector<2x128xf32> to vector<1x1x2x128xf32>
    tpu.vector_store %arg3[%c2_204, %c6_205, %c0_206, %c0_207], %409 {strides = array<i32>} : memref<4x9x2x128xf32, #tpu.memory_space<vmem>>, vector<1x1x2x128xf32>,
    %c112_i32_208 = arith.constant 112 : i32
    %410 = tpu.dynamic_rotate %317 by %c112_i32_208 dim 1 : vector<4x128xf32>, i32 -> vector<4x128xf32>
    %411 = vector.extract_strided_slice %410 {offsets = [1, 0], sizes = [2, 128], strides = [1, 1]} : vector<4x128xf32> to vector<2x128xf32>
    %c112_i32_209 = arith.constant 112 : i32
    %412 = vector.broadcast %c112_i32_209 : i32 to vector<2x128xi32>
    %413 = arith.cmpi sge, %32, %412 : vector<2x128xi32>
    %414 = vector.extract_strided_slice %410 {offsets = [2, 0], sizes = [2, 128], strides = [1, 1]} : vector<4x128xf32> to vector<2x128xf32>
    %415 = arith.select %413, %414, %411 : vector<2x128xi1>, vector<2x128xf32>
    %cst_210 = arith.constant 0.000000e+00 : f32
    %416 = vector.broadcast %cst_210 : f32 to vector<2x128xf32>
    %417 = arith.select %69, %416, %415 : vector<2x128xi1>, vector<2x128xf32>
    %418 = arith.cmpf ogt, %417, %318 : vector<2x128xf32>
    %419 = arith.extui %418 : vector<2x128xi1> to vector<2x128xi32>
    %420 = arith.sitofp %419 : vector<2x128xi32> to vector<2x128xf32>
    %c2_211 = arith.constant 2 : index
    %c7_212 = arith.constant 7 : index
    %c0_213 = arith.constant 0 : index
    %c0_214 = arith.constant 0 : index
    %421 = vector.load %arg3[%c2_211, %c7_212, %c0_213, %c0_214] : memref<4x9x2x128xf32, #tpu.memory_space<vmem>>, vector<1x1x2x128xf32>
    %422 = vector.shape_cast %421 : vector<1x1x2x128xf32> to vector<2x128xf32>
    %423 = vector.shape_cast %420 : vector<2x128xf32> to vector<1x1x2x128xf32>
    tpu.vector_store %arg3[%c2_211, %c7_212, %c0_213, %c0_214], %423 {strides = array<i32>} : memref<4x9x2x128xf32, #tpu.memory_space<vmem>>, vector<1x1x2x128xf32>,
    %c111_i32_215 = arith.constant 111 : i32
    %424 = tpu.dynamic_rotate %317 by %c111_i32_215 dim 1 : vector<4x128xf32>, i32 -> vector<4x128xf32>
    %425 = vector.extract_strided_slice %424 {offsets = [1, 0], sizes = [2, 128], strides = [1, 1]} : vector<4x128xf32> to vector<2x128xf32>
    %c111_i32_216 = arith.constant 111 : i32
    %426 = vector.broadcast %c111_i32_216 : i32 to vector<2x128xi32>
    %427 = arith.cmpi sge, %32, %426 : vector<2x128xi32>
    %428 = vector.extract_strided_slice %424 {offsets = [2, 0], sizes = [2, 128], strides = [1, 1]} : vector<4x128xf32> to vector<2x128xf32>
    %429 = arith.select %427, %428, %425 : vector<2x128xi1>, vector<2x128xf32>
    %430 = arith.ori %69, %53 : vector<2x128xi1>
    %cst_217 = arith.constant 0.000000e+00 : f32
    %431 = vector.broadcast %cst_217 : f32 to vector<2x128xf32>
    %432 = arith.select %430, %431, %429 : vector<2x128xi1>, vector<2x128xf32>
    %433 = arith.cmpf ogt, %432, %318 : vector<2x128xf32>
    %434 = arith.extui %433 : vector<2x128xi1> to vector<2x128xi32>
    %435 = arith.sitofp %434 : vector<2x128xi32> to vector<2x128xf32>
    %c2_218 = arith.constant 2 : index
    %c8_219 = arith.constant 8 : index
    %c0_220 = arith.constant 0 : index
    %c0_221 = arith.constant 0 : index
    %436 = vector.load %arg3[%c2_218, %c8_219, %c0_220, %c0_221] : memref<4x9x2x128xf32, #tpu.memory_space<vmem>>, vector<1x1x2x128xf32>
    %437 = vector.shape_cast %436 : vector<1x1x2x128xf32> to vector<2x128xf32>
    %438 = vector.shape_cast %435 : vector<2x128xf32> to vector<1x1x2x128xf32>
    tpu.vector_store %arg3[%c2_218, %c8_219, %c0_220, %c0_221], %438 {strides = array<i32>} : memref<4x9x2x128xf32, #tpu.memory_space<vmem>>, vector<1x1x2x128xf32>,
    %c3_222 = arith.constant 3 : index
    %c0_223 = arith.constant 0 : index
    %c0_224 = arith.constant 0 : index
    %439 = vector.load %arg4[%c3_222, %c0_223, %c0_224] : memref<4x4x128xf32, #tpu.memory_space<vmem>>, vector<1x4x128xf32>
    %440 = vector.shape_cast %439 : vector<1x4x128xf32> to vector<4x128xf32>
    %441 = vector.extract_strided_slice %440 {offsets = [1, 0], sizes = [2, 128], strides = [1, 1]} : vector<4x128xf32> to vector<2x128xf32>
    %c17_i32_225 = arith.constant 17 : i32
    %442 = tpu.dynamic_rotate %440 by %c17_i32_225 dim 1 : vector<4x128xf32>, i32 -> vector<4x128xf32>
    %443 = vector.extract_strided_slice %442 {offsets = [1, 0], sizes = [2, 128], strides = [1, 1]} : vector<4x128xf32> to vector<2x128xf32>
    %c17_i32_226 = arith.constant 17 : i32
    %444 = vector.broadcast %c17_i32_226 : i32 to vector<2x128xi32>
    %445 = arith.cmpi slt, %32, %444 : vector<2x128xi32>
    %446 = vector.extract_strided_slice %442 {offsets = [0, 0], sizes = [2, 128], strides = [1, 1]} : vector<4x128xf32> to vector<2x128xf32>
    %447 = arith.select %445, %446, %443 : vector<2x128xi1>, vector<2x128xf32>
    %448 = arith.ori %61, %51 : vector<2x128xi1>
    %cst_227 = arith.constant 0.000000e+00 : f32
    %449 = vector.broadcast %cst_227 : f32 to vector<2x128xf32>
    %450 = arith.select %448, %449, %447 : vector<2x128xi1>, vector<2x128xf32>
    %451 = arith.cmpf ogt, %450, %441 : vector<2x128xf32>
    %452 = arith.extui %451 : vector<2x128xi1> to vector<2x128xi32>
    %453 = arith.sitofp %452 : vector<2x128xi32> to vector<2x128xf32>
    %c3_228 = arith.constant 3 : index
    %c0_229 = arith.constant 0 : index
    %c0_230 = arith.constant 0 : index
    %c0_231 = arith.constant 0 : index
    %454 = vector.load %arg3[%c3_228, %c0_229, %c0_230, %c0_231] : memref<4x9x2x128xf32, #tpu.memory_space<vmem>>, vector<1x1x2x128xf32>
    %455 = vector.shape_cast %454 : vector<1x1x2x128xf32> to vector<2x128xf32>
    %456 = vector.shape_cast %453 : vector<2x128xf32> to vector<1x1x2x128xf32>
    tpu.vector_store %arg3[%c3_228, %c0_229, %c0_230, %c0_231], %456 {strides = array<i32>} : memref<4x9x2x128xf32, #tpu.memory_space<vmem>>, vector<1x1x2x128xf32>,
    %c16_i32_232 = arith.constant 16 : i32
    %457 = tpu.dynamic_rotate %440 by %c16_i32_232 dim 1 : vector<4x128xf32>, i32 -> vector<4x128xf32>
    %458 = vector.extract_strided_slice %457 {offsets = [1, 0], sizes = [2, 128], strides = [1, 1]} : vector<4x128xf32> to vector<2x128xf32>
    %c16_i32_233 = arith.constant 16 : i32
    %459 = vector.broadcast %c16_i32_233 : i32 to vector<2x128xi32>
    %460 = arith.cmpi slt, %32, %459 : vector<2x128xi32>
    %461 = vector.extract_strided_slice %457 {offsets = [0, 0], sizes = [2, 128], strides = [1, 1]} : vector<4x128xf32> to vector<2x128xf32>
    %462 = arith.select %460, %461, %458 : vector<2x128xi1>, vector<2x128xf32>
    %cst_234 = arith.constant 0.000000e+00 : f32
    %463 = vector.broadcast %cst_234 : f32 to vector<2x128xf32>
    %464 = arith.select %61, %463, %462 : vector<2x128xi1>, vector<2x128xf32>
    %465 = arith.cmpf ogt, %464, %441 : vector<2x128xf32>
    %466 = arith.extui %465 : vector<2x128xi1> to vector<2x128xi32>
    %467 = arith.sitofp %466 : vector<2x128xi32> to vector<2x128xf32>
    %c3_235 = arith.constant 3 : index
    %c1_236 = arith.constant 1 : index
    %c0_237 = arith.constant 0 : index
    %c0_238 = arith.constant 0 : index
    %468 = vector.load %arg3[%c3_235, %c1_236, %c0_237, %c0_238] : memref<4x9x2x128xf32, #tpu.memory_space<vmem>>, vector<1x1x2x128xf32>
    %469 = vector.shape_cast %468 : vector<1x1x2x128xf32> to vector<2x128xf32>
    %470 = vector.shape_cast %467 : vector<2x128xf32> to vector<1x1x2x128xf32>
    tpu.vector_store %arg3[%c3_235, %c1_236, %c0_237, %c0_238], %470 {strides = array<i32>} : memref<4x9x2x128xf32, #tpu.memory_space<vmem>>, vector<1x1x2x128xf32>,
    %c15_i32_239 = arith.constant 15 : i32
    %471 = tpu.dynamic_rotate %440 by %c15_i32_239 dim 1 : vector<4x128xf32>, i32 -> vector<4x128xf32>
    %472 = vector.extract_strided_slice %471 {offsets = [1, 0], sizes = [2, 128], strides = [1, 1]} : vector<4x128xf32> to vector<2x128xf32>
    %c15_i32_240 = arith.constant 15 : i32
    %473 = vector.broadcast %c15_i32_240 : i32 to vector<2x128xi32>
    %474 = arith.cmpi slt, %32, %473 : vector<2x128xi32>
    %475 = vector.extract_strided_slice %471 {offsets = [0, 0], sizes = [2, 128], strides = [1, 1]} : vector<4x128xf32> to vector<2x128xf32>
    %476 = arith.select %474, %475, %472 : vector<2x128xi1>, vector<2x128xf32>
    %477 = arith.ori %61, %53 : vector<2x128xi1>
    %cst_241 = arith.constant 0.000000e+00 : f32
    %478 = vector.broadcast %cst_241 : f32 to vector<2x128xf32>
    %479 = arith.select %477, %478, %476 : vector<2x128xi1>, vector<2x128xf32>
    %480 = arith.cmpf ogt, %479, %441 : vector<2x128xf32>
    %481 = arith.extui %480 : vector<2x128xi1> to vector<2x128xi32>
    %482 = arith.sitofp %481 : vector<2x128xi32> to vector<2x128xf32>
    %c3_242 = arith.constant 3 : index
    %c2_243 = arith.constant 2 : index
    %c0_244 = arith.constant 0 : index
    %c0_245 = arith.constant 0 : index
    %483 = vector.load %arg3[%c3_242, %c2_243, %c0_244, %c0_245] : memref<4x9x2x128xf32, #tpu.memory_space<vmem>>, vector<1x1x2x128xf32>
    %484 = vector.shape_cast %483 : vector<1x1x2x128xf32> to vector<2x128xf32>
    %485 = vector.shape_cast %482 : vector<2x128xf32> to vector<1x1x2x128xf32>
    tpu.vector_store %arg3[%c3_242, %c2_243, %c0_244, %c0_245], %485 {strides = array<i32>} : memref<4x9x2x128xf32, #tpu.memory_space<vmem>>, vector<1x1x2x128xf32>,
    %c1_i32_246 = arith.constant 1 : i32
    %486 = tpu.dynamic_rotate %440 by %c1_i32_246 dim 1 : vector<4x128xf32>, i32 -> vector<4x128xf32>
    %487 = vector.extract_strided_slice %486 {offsets = [1, 0], sizes = [2, 128], strides = [1, 1]} : vector<4x128xf32> to vector<2x128xf32>
    %c1_i32_247 = arith.constant 1 : i32
    %488 = vector.broadcast %c1_i32_247 : i32 to vector<2x128xi32>
    %489 = arith.cmpi slt, %32, %488 : vector<2x128xi32>
    %490 = vector.extract_strided_slice %486 {offsets = [0, 0], sizes = [2, 128], strides = [1, 1]} : vector<4x128xf32> to vector<2x128xf32>
    %491 = arith.select %489, %490, %487 : vector<2x128xi1>, vector<2x128xf32>
    %cst_248 = arith.constant 0.000000e+00 : f32
    %492 = vector.broadcast %cst_248 : f32 to vector<2x128xf32>
    %493 = arith.select %51, %492, %491 : vector<2x128xi1>, vector<2x128xf32>
    %494 = arith.cmpf ogt, %493, %441 : vector<2x128xf32>
    %495 = arith.extui %494 : vector<2x128xi1> to vector<2x128xi32>
    %496 = arith.sitofp %495 : vector<2x128xi32> to vector<2x128xf32>
    %c3_249 = arith.constant 3 : index
    %c3_250 = arith.constant 3 : index
    %c0_251 = arith.constant 0 : index
    %c0_252 = arith.constant 0 : index
    %497 = vector.load %arg3[%c3_249, %c3_250, %c0_251, %c0_252] : memref<4x9x2x128xf32, #tpu.memory_space<vmem>>, vector<1x1x2x128xf32>
    %498 = vector.shape_cast %497 : vector<1x1x2x128xf32> to vector<2x128xf32>
    %499 = vector.shape_cast %496 : vector<2x128xf32> to vector<1x1x2x128xf32>
    tpu.vector_store %arg3[%c3_249, %c3_250, %c0_251, %c0_252], %499 {strides = array<i32>} : memref<4x9x2x128xf32, #tpu.memory_space<vmem>>, vector<1x1x2x128xf32>,
    %cst_253 = arith.constant 0.000000e+00 : f32
    %500 = vector.broadcast %cst_253 : f32 to vector<2x128xf32>
    %c3_254 = arith.constant 3 : index
    %c4_255 = arith.constant 4 : index
    %c0_256 = arith.constant 0 : index
    %c0_257 = arith.constant 0 : index
    %501 = vector.load %arg3[%c3_254, %c4_255, %c0_256, %c0_257] : memref<4x9x2x128xf32, #tpu.memory_space<vmem>>, vector<1x1x2x128xf32>
    %502 = vector.shape_cast %501 : vector<1x1x2x128xf32> to vector<2x128xf32>
    %503 = vector.shape_cast %500 : vector<2x128xf32> to vector<1x1x2x128xf32>
    tpu.vector_store %arg3[%c3_254, %c4_255, %c0_256, %c0_257], %503 {strides = array<i32>} : memref<4x9x2x128xf32, #tpu.memory_space<vmem>>, vector<1x1x2x128xf32>,
    %c127_i32_258 = arith.constant 127 : i32
    %504 = tpu.dynamic_rotate %440 by %c127_i32_258 dim 1 : vector<4x128xf32>, i32 -> vector<4x128xf32>
    %505 = vector.extract_strided_slice %504 {offsets = [1, 0], sizes = [2, 128], strides = [1, 1]} : vector<4x128xf32> to vector<2x128xf32>
    %c127_i32_259 = arith.constant 127 : i32
    %506 = vector.broadcast %c127_i32_259 : i32 to vector<2x128xi32>
    %507 = arith.cmpi sge, %32, %506 : vector<2x128xi32>
    %508 = vector.extract_strided_slice %504 {offsets = [2, 0], sizes = [2, 128], strides = [1, 1]} : vector<4x128xf32> to vector<2x128xf32>
    %509 = arith.select %507, %508, %505 : vector<2x128xi1>, vector<2x128xf32>
    %cst_260 = arith.constant 0.000000e+00 : f32
    %510 = vector.broadcast %cst_260 : f32 to vector<2x128xf32>
    %511 = arith.select %53, %510, %509 : vector<2x128xi1>, vector<2x128xf32>
    %512 = arith.cmpf ogt, %511, %441 : vector<2x128xf32>
    %513 = arith.extui %512 : vector<2x128xi1> to vector<2x128xi32>
    %514 = arith.sitofp %513 : vector<2x128xi32> to vector<2x128xf32>
    %c3_261 = arith.constant 3 : index
    %c5_262 = arith.constant 5 : index
    %c0_263 = arith.constant 0 : index
    %c0_264 = arith.constant 0 : index
    %515 = vector.load %arg3[%c3_261, %c5_262, %c0_263, %c0_264] : memref<4x9x2x128xf32, #tpu.memory_space<vmem>>, vector<1x1x2x128xf32>
    %516 = vector.shape_cast %515 : vector<1x1x2x128xf32> to vector<2x128xf32>
    %517 = vector.shape_cast %514 : vector<2x128xf32> to vector<1x1x2x128xf32>
    tpu.vector_store %arg3[%c3_261, %c5_262, %c0_263, %c0_264], %517 {strides = array<i32>} : memref<4x9x2x128xf32, #tpu.memory_space<vmem>>, vector<1x1x2x128xf32>,
    %c113_i32_265 = arith.constant 113 : i32
    %518 = tpu.dynamic_rotate %440 by %c113_i32_265 dim 1 : vector<4x128xf32>, i32 -> vector<4x128xf32>
    %519 = vector.extract_strided_slice %518 {offsets = [1, 0], sizes = [2, 128], strides = [1, 1]} : vector<4x128xf32> to vector<2x128xf32>
    %c113_i32_266 = arith.constant 113 : i32
    %520 = vector.broadcast %c113_i32_266 : i32 to vector<2x128xi32>
    %521 = arith.cmpi sge, %32, %520 : vector<2x128xi32>
    %522 = vector.extract_strided_slice %518 {offsets = [2, 0], sizes = [2, 128], strides = [1, 1]} : vector<4x128xf32> to vector<2x128xf32>
    %523 = arith.select %521, %522, %519 : vector<2x128xi1>, vector<2x128xf32>
    %524 = arith.ori %69, %51 : vector<2x128xi1>
    %cst_267 = arith.constant 0.000000e+00 : f32
    %525 = vector.broadcast %cst_267 : f32 to vector<2x128xf32>
    %526 = arith.select %524, %525, %523 : vector<2x128xi1>, vector<2x128xf32>
    %527 = arith.cmpf ogt, %526, %441 : vector<2x128xf32>
    %528 = arith.extui %527 : vector<2x128xi1> to vector<2x128xi32>
    %529 = arith.sitofp %528 : vector<2x128xi32> to vector<2x128xf32>
    %c3_268 = arith.constant 3 : index
    %c6_269 = arith.constant 6 : index
    %c0_270 = arith.constant 0 : index
    %c0_271 = arith.constant 0 : index
    %530 = vector.load %arg3[%c3_268, %c6_269, %c0_270, %c0_271] : memref<4x9x2x128xf32, #tpu.memory_space<vmem>>, vector<1x1x2x128xf32>
    %531 = vector.shape_cast %530 : vector<1x1x2x128xf32> to vector<2x128xf32>
    %532 = vector.shape_cast %529 : vector<2x128xf32> to vector<1x1x2x128xf32>
    tpu.vector_store %arg3[%c3_268, %c6_269, %c0_270, %c0_271], %532 {strides = array<i32>} : memref<4x9x2x128xf32, #tpu.memory_space<vmem>>, vector<1x1x2x128xf32>,
    %c112_i32_272 = arith.constant 112 : i32
    %533 = tpu.dynamic_rotate %440 by %c112_i32_272 dim 1 : vector<4x128xf32>, i32 -> vector<4x128xf32>
    %534 = vector.extract_strided_slice %533 {offsets = [1, 0], sizes = [2, 128], strides = [1, 1]} : vector<4x128xf32> to vector<2x128xf32>
    %c112_i32_273 = arith.constant 112 : i32
    %535 = vector.broadcast %c112_i32_273 : i32 to vector<2x128xi32>
    %536 = arith.cmpi sge, %32, %535 : vector<2x128xi32>
    %537 = vector.extract_strided_slice %533 {offsets = [2, 0], sizes = [2, 128], strides = [1, 1]} : vector<4x128xf32> to vector<2x128xf32>
    %538 = arith.select %536, %537, %534 : vector<2x128xi1>, vector<2x128xf32>
    %cst_274 = arith.constant 0.000000e+00 : f32
    %539 = vector.broadcast %cst_274 : f32 to vector<2x128xf32>
    %540 = arith.select %69, %539, %538 : vector<2x128xi1>, vector<2x128xf32>
    %541 = arith.cmpf ogt, %540, %441 : vector<2x128xf32>
    %542 = arith.extui %541 : vector<2x128xi1> to vector<2x128xi32>
    %543 = arith.sitofp %542 : vector<2x128xi32> to vector<2x128xf32>
    %c3_275 = arith.constant 3 : index
    %c7_276 = arith.constant 7 : index
    %c0_277 = arith.constant 0 : index
    %c0_278 = arith.constant 0 : index
    %544 = vector.load %arg3[%c3_275, %c7_276, %c0_277, %c0_278] : memref<4x9x2x128xf32, #tpu.memory_space<vmem>>, vector<1x1x2x128xf32>
    %545 = vector.shape_cast %544 : vector<1x1x2x128xf32> to vector<2x128xf32>
    %546 = vector.shape_cast %543 : vector<2x128xf32> to vector<1x1x2x128xf32>
    tpu.vector_store %arg3[%c3_275, %c7_276, %c0_277, %c0_278], %546 {strides = array<i32>} : memref<4x9x2x128xf32, #tpu.memory_space<vmem>>, vector<1x1x2x128xf32>,
    %c111_i32_279 = arith.constant 111 : i32
    %547 = tpu.dynamic_rotate %440 by %c111_i32_279 dim 1 : vector<4x128xf32>, i32 -> vector<4x128xf32>
    %548 = vector.extract_strided_slice %547 {offsets = [1, 0], sizes = [2, 128], strides = [1, 1]} : vector<4x128xf32> to vector<2x128xf32>
    %c111_i32_280 = arith.constant 111 : i32
    %549 = vector.broadcast %c111_i32_280 : i32 to vector<2x128xi32>
    %550 = arith.cmpi sge, %32, %549 : vector<2x128xi32>
    %551 = vector.extract_strided_slice %547 {offsets = [2, 0], sizes = [2, 128], strides = [1, 1]} : vector<4x128xf32> to vector<2x128xf32>
    %552 = arith.select %550, %551, %548 : vector<2x128xi1>, vector<2x128xf32>
    %553 = arith.ori %69, %53 : vector<2x128xi1>
    %cst_281 = arith.constant 0.000000e+00 : f32
    %554 = vector.broadcast %cst_281 : f32 to vector<2x128xf32>
    %555 = arith.select %553, %554, %552 : vector<2x128xi1>, vector<2x128xf32>
    %556 = arith.cmpf ogt, %555, %441 : vector<2x128xf32>
    %557 = arith.extui %556 : vector<2x128xi1> to vector<2x128xi32>
    %558 = arith.sitofp %557 : vector<2x128xi32> to vector<2x128xf32>
    %c3_282 = arith.constant 3 : index
    %c8_283 = arith.constant 8 : index
    %c0_284 = arith.constant 0 : index
    %c0_285 = arith.constant 0 : index
    %559 = vector.load %arg3[%c3_282, %c8_283, %c0_284, %c0_285] : memref<4x9x2x128xf32, #tpu.memory_space<vmem>>, vector<1x1x2x128xf32>
    %560 = vector.shape_cast %559 : vector<1x1x2x128xf32> to vector<2x128xf32>
    %561 = vector.shape_cast %558 : vector<2x128xf32> to vector<1x1x2x128xf32>
    tpu.vector_store %arg3[%c3_282, %c8_283, %c0_284, %c0_285], %561 {strides = array<i32>} : memref<4x9x2x128xf32, #tpu.memory_space<vmem>>, vector<1x1x2x128xf32>,
    return
  }
  func.func @transform_1(%arg0: i32, %arg1: i32) -> (i32, i32, i32, i32) {
    %c0_i32 = arith.constant 0 : i32
    %c0_i32_0 = arith.constant 0 : i32
    %c0_i32_1 = arith.constant 0 : i32
    return %arg0, %c0_i32, %arg1, %c0_i32_0 : i32, i32, i32, i32
  }
}

</mosaic_0001>

<bundles_post_ra>
// kernel: tpu_custom_call.1
= control target key start
LH: loop header
LB: loop body
LE: loop exit
PB: predicated region body
PF: predicated region fallthrough
CT: control target
= control target key end

     0   :  { %6 = vsyncpa [#allocation5], 0  ;;  %s1465_s0 = inlined_call_operand.hbm [shape: f32[8,2,128], index: 0, kind: input, shape index: {}]   ;;  %s1466_s1 = inlined_call_operand.hbm [shape: f32[8,9,2,128], index: 1, kind: output, shape index: {}]  }
   0x1   :  { %8 = vsyncpa [#allocation5 + $0x1], 0  ;;  %s1010_s6 = smov 0   ;;  %s1012_s7 = smov 0  }
   0x2   :  { %s1014_s8 = smov 0   ;;  %s1016_s9 = smov 0  }
   0x3 LB: > { %s23_s10 = sadd.s32 1, %s979_s8  ;;  %s706_s11 = sadd.s32 4294967295, %s983_s9   ;;  %s983_s9 = sphi %s1016_s9, %s14_s9   ;;  %s979_s8 = sphi %s1014_s8, %s1497_s8   ;;  %s975_s7 = sphi %s1012_s7, %s1496_s7   ;;  %s971_s6 = sphi %s1010_s6, %s1495_s6  }
   0x4   : > { %p25_p0 = scmp.ge.s32.totalorder %s23_s10, 2  ;;  %p41_p1 = scmp.ne.s32.totalorder %s975_s7, %s971_s6 }
   0x5   : > { %s32_s12 = sadd.s32 1, %s975_s7  ;;  %p42_p2 = scmp.eq.s32.totalorder %s706_s11, 1 }
   0x6   : > { %s1499_s10 = smov (%p25_p0, %s23_s10), 0  ;;  %p36_p3 = scmp.eq.s32.totalorder %s983_s9, 1 }
   0x7   : > { %s27_s13 = ssub.s32 %s979_s8, %s1499_s10  ;;  %p1040_p6 = por %p42_p2, %p41_p1 }
   0x8   : > { %p30_p4 = scmp.eq.s32.totalorder %s27_s13, 0  ;;  %p707_p5 = scmp.ne.s32.totalorder %s27_s13, 0 }
   0x9   : > { %p708_p8 = scmp.ge.s32.totalorder %s983_s9, 2 }
   0xa   : > { %s1045_s15 = scalar_select %p30_p4, %s975_s7, %s32_s12  }
   0xb   : > { %p1047_p7 = por %p707_p5, %p36_p3  ;;  %51 = sbr.rel (%p708_p8) target bundleno = 235 (0xeb), region = 12 }
   0xc   : > { %s56_s17 = sand.u32 (!%p708_p8), 1, %s975_s7   ;;  %s786_s18 = sshll.u32 (!%p708_p8), %s979_s8, 3 }
   0xd   : > { %s787_s19 = smul.u32 (!%p708_p8), 72, %s56_s17  ;;  %s70_s22 = scalar_lea.hbm (!%p708_p8), %s1465_s0, %s786_s18 }
   0xe   : > { %s72_s23 = sshll.u32 (!%p708_p8), %s70_s22, 4  ;;  %s985_s24 = smov (!%p708_p8), [#allocation2 + $0x1]   ;;  %s73_s23 = int_to_ptr.hbm [resolvable:$true] %s72_s23 }
   0xf   : > { %s74_s25 = sshll.u32 (!%p708_p8), %s985_s24, 4  ;;  %s91_s26 = sadd.s32 (!%p708_p8), 1, %s786_s18  ;;  %s75_s25 = int_to_ptr.vmem [resolvable:$true] %s74_s25 }
  0x10   : > { %s986_s27 = smov 32   ;;  %s987_s28 = smov 64  }
  0x11   : > { %s988_s29 = smov 2   ;;  %s92_s3 = scalar_lea.hbm %s1465_s0, %s91_s26 }
  0x12   : > { %79 = dma.hbm_to_vmem [thread:$0]  %s73_s23, 128, %s75_s25, [#allocation3], %s986_s27, %s987_s28, %s988_s29 }
  0x13   : > { %s989_s4 = smov [#allocation2]   ;;  %s95_s11 = sshll.u32 %s92_s3, 4  ;;  %s96_s11 = int_to_ptr.hbm [resolvable:$true] %s95_s11 }
  0x14   : > { %s85_s5 = sshll.u32 %s989_s4, 4  ;;  %s990_s12 = smov 1   ;;  %s86_s5 = int_to_ptr.vmem [resolvable:$true] %s85_s5 }
  0x15   : > { %90 = dma.hbm_to_vmem [thread:$0]  %s73_s23, 64, %s86_s5, [#allocation3 + $0x1], %s986_s27, %s987_s28, %s990_s12 }
  0x16   : > { %s991_s13 = smov [#allocation2 + $0x3]   ;;  %s1068_s20 = scalar_lea.vmem [#allocation4], %s787_s19 }
  0x17   : > { %s97_s18 = sshll.u32 %s991_s13, 4  ;;  %s98_s18 = int_to_ptr.vmem [resolvable:$true] %s97_s18 }
  0x18   : > { %102 = dma.hbm_to_vmem [thread:$0]  %s96_s11, 64, %s98_s18, [#allocation3 + $0x2], %s986_s27, %s987_s28, %s990_s12 }
  0x19   : > { %959 = dma.done.wait [#allocation3], 128 }
  0x1a   : > { %960 = vsyncadd [#allocation3], 4294967168 }
  0x1b   : > { %961 = dma.done.wait [#allocation3 + $0x1], 64 }
  0x1c   : > { %962 = vsyncadd [#allocation3 + $0x1], 4294967232 }
  0x1d   : > { %963 = dma.done.wait [#allocation3 + $0x2], 64 }
  0x1e   : > { %964 = vsyncadd [#allocation3 + $0x2], 4294967232  ;;  %v1070_v0 = vld [vmem:[#allocation2] sm:$0xf]  ;;  %s992_s21 = smov 15   ;;  %s993_s22 = smov 17   ;;  %v113_v5 = vlaneseq }
  0x1f   : > { %172 = vrot.lane.b32.xlu1 %v1070_v0, %s992_s21  ;;  %144 = vrot.lane.b32.xlu0 %v1070_v0, %s993_s22  ;;  %s994_s23 = smov 127   ;;  %s995_s19 = smov 16   ;;  %v1085_v1 = vld [vmem:[#allocation2 + $0x4] sm:$0xf]  ;;  %v1099_v2 = vld [vmem:[#allocation2 + $0x8] sm:$0xf] }
  0x20   : > { %201 = vrot.lane.b32.xlu2 %v1070_v0, %s994_s23  ;;  %s996_s24 = smov 113   ;;  %s997_s25 = smov 111   ;;  %v1104_v3 = vld [vmem:[#allocation2 + $0xc] sm:$0xf]  ;;  %v999_v4 = vmov 0.0   ;;  %v1138_v6 = vand.u32 127, %v113_v5 }
  0x21   : > { %s998_s26 = smov 112   ;;  %718 = vst [vmem:[%s1068_s20 + $0x8] sm:$0x3] %v999_v4  ;;  %v209_v10 = vrot.slane %v1070_v0, 7  ;;  %v116_v14 = vshrl.u32 %v113_v5, 7  ;;  %v1177_v23 = vrot.slane %v1070_v0, 1 }
  0x22   : > { %735 = vst [vmem:[%s1068_s20 + $0x1a] sm:$0x3] %v999_v4  ;;  %v121_v7 = vand.u32 15, %v1138_v6  ;;  %vm203_vm0 = vcmp.ge.s32.totalorder %v1138_v6, 127  ;;  %vm140_vm4 = vcmp.ge.s32.totalorder %v1138_v6, 112  ;;  %vm218_vm6 = vcmp.ge.s32.totalorder %v1138_v6, 113 }
  0x23   : > { %752 = vst [vmem:[%s1068_s20 + $0x2c] sm:$0x3] %v999_v4  ;;  %vm139_vm3 = vcmp.eq.s32.totalorder %v116_v14, 1  ;;  %vm132_vm9 = vcmp.eq.s32.totalorder %v116_v14, 0  ;;  %vm133_vm10 = vcmp.lt.s32.totalorder %v1138_v6, 16  ;;  %v1191_v28 = vrot.slane %v1085_v1, 1 }
  0x24   : > { %769 = vst [vmem:[%s1068_s20 + $0x3e] sm:$0x3] %v999_v4  ;;  %vm1143_vm1 = vcmp.eq.s32.totalorder %v121_v7, 15  ;;  %vm1156_vm5 = vmand %vm139_vm3, %vm140_vm4  ;;  %vm1161_vm7 = vcmp.eq.s32.totalorder %v121_v7, 0  ;;  %vm1467_vm13 = vcmp.lt.s32.totalorder %v1138_v6, 17  ;;  %s788_s28 = smul.u32 72, %s979_s8 }
  0x25   : > { %vm1169_vm8 = vmor %vm1156_vm5, %vm1161_vm7  ;;  %v555_v25 = vrot.slane %v1104_v3, 7  ;;  %s622_s8 = sshll.u32 %s1068_s20, 4  ;;  %s608_s5 = scalar_lea.sflag [#allocation5], %s56_s17  ;;  %s623_s8 = int_to_ptr.vmem [resolvable:$true] %s622_s8 }
  0x26   : > { %vm1184_vm12 = vmand %vm132_vm9, %vm133_vm10  ;;  %vm1468_vm9 = vcmp.lt.s32.totalorder %v1138_v6, 1  ;;  %s621_s3 = scalar_lea.hbm %s1466_s1, %s788_s28 }
  0x27   : > { %186 = vrot.lane.b32.xlu1 %v1070_v0, %s990_s12  ;;  %160 = vrot.lane.b32.xlu0 %v1070_v0, %s995_s19  ;;  %vm1198_vm14 = vmor %vm1184_vm12, %vm1161_vm7  ;;  %s624_s4 = sshll.u32 %s621_s3, 4  ;;  %s625_s4 = int_to_ptr.hbm [resolvable:$true] %s624_s4 }
  0x28   : > { %216 = vrot.lane.b32.xlu2 %v1070_v0, %s996_s24  ;;  %vm1214_vm3 = vmor %vm1184_vm12, %vm1143_vm1 }
  0x2f   : > { %248 = vrot.lane.b32.xlu1 %v1070_v0, %s997_s25  ;;  %233 = vrot.lane.b32.xlu0 %v1070_v0, %s998_s26 }
  0x30   : > { %267 = vrot.lane.b32.xlu2 %v1085_v1, %s993_s22 }
  0x37   : > { %294 = vrot.lane.b32.xlu1 %v1085_v1, %s992_s21  ;;  %282 = vrot.lane.b32.xlu0 %v1085_v1, %s995_s19 }
  0x38   : > { %306 = vrot.lane.b32.xlu2 %v1085_v1, %s990_s12 }
  0x3f   : > { %334 = vrot.lane.b32.xlu1 %v1085_v1, %s996_s24  ;;  %320 = vrot.lane.b32.xlu0 %v1085_v1, %s994_s23 }
  0x40   : > { %349 = vrot.lane.b32.xlu2 %v1085_v1, %s998_s26 }
  0x47   : > { %448 = vrot.lane.b32.xlu1 %v1099_v2, %s996_s24  ;;  %364 = vrot.lane.b32.xlu0 %v1085_v1, %s997_s25 }
  0x48   : > { %463 = vrot.lane.b32.xlu2 %v1099_v2, %s998_s26 }
  0x4f   : > { %562 = vrot.lane.b32.xlu1 %v1104_v3, %s996_s24  ;;  %478 = vrot.lane.b32.xlu0 %v1099_v2, %s997_s25 }
  0x50   : > { %577 = vrot.lane.b32.xlu2 %v1104_v3, %s998_s26 }
  0x57   : > { %381 = vrot.lane.b32.xlu1 %v1099_v2, %s993_s22  ;;  %592 = vrot.lane.b32.xlu0 %v1104_v3, %s997_s25 }
  0x58   : > { %396 = vrot.lane.b32.xlu2 %v1099_v2, %s995_s19 }
  0x5f   : > { %420 = vrot.lane.b32.xlu1 %v1099_v2, %s990_s12  ;;  %408 = vrot.lane.b32.xlu0 %v1099_v2, %s992_s21 }
  0x60   : > { %434 = vrot.lane.b32.xlu2 %v1099_v2, %s994_s23 }
  0x67   : > { %510 = vrot.lane.b32.xlu1 %v1104_v3, %s995_s19  ;;  %495 = vrot.lane.b32.xlu0 %v1104_v3, %s993_s22 }
  0x68   : > { %522 = vrot.lane.b32.xlu2 %v1104_v3, %s992_s21 }
  0x6f   : > { %548 = vrot.lane.b32.xlu1 %v1104_v3, %s994_s23  ;;  %534 = vrot.lane.b32.xlu0 %v1104_v3, %s990_s12 }
  0x7a   : > { %v202_v8 = vpop.permute.xlu2 %201 }
  0x7b   : > { %v205_v9 = vrot.slane %v202_v8, 7 }
  0x7d   : > { %v207_v12 = vsel %vm203_vm0, %v202_v8, %v205_v9 }
  0x7e   : > { %v208_v13 = vsel %vm1143_vm1, 0.0, %v207_v12 }
  0x7f   : > { %vm211_vm2 = vcmp.gt.f32.partialorder %v208_v13, %v209_v10 }
  0x80   : > { %v719_v15 = vsel %vm211_vm2, 1.0, %v999_v4  ;;  %vm174_vm2 = vcmp.lt.s32.totalorder %v1138_v6, 15 }
  0x81   : > { %720 = vst [vmem:[%s1068_s20 + $0x8] sm:$0xc] %v719_v15 }
  0x82   : > { %v217_v17 = vpop.permute.xlu2 %216 }
  0x83   : > { %v220_v18 = vrot.slane %v217_v17, 7 }
  0x85   : > { %v222_v21 = vsel %vm218_vm6, %v217_v17, %v220_v18 }
  0x86   : > { %v225_v22 = vrot.slane %v222_v21, 2 }
  0x88   : > { %v227_v24 = vsel %vm1169_vm8, 0.0, %v225_v22 }
  0x89   : > { %vm228_vm11 = vcmp.gt.f32.partialorder %v227_v24, %v1177_v23 }
  0x8a   : > { %v721_v26 = vsel %vm228_vm11, 1.0, %v999_v4  ;;  %v268_v27 = vpop.permute.xlu2 %267 }
  0x8b   : > { %722 = vst [vmem:[%s1068_s20 + $0xc] sm:$0x3] %v721_v26  ;;  %v270_v29 = vrot.slane %v268_v27, 1 }
  0x8d   : > { %v272_v31 = vsel %vm1467_vm13, %v268_v27, %v270_v29  ;;  %v1281_v29 = vrot.slane %v1099_v2, 1 }
  0x8e   : > { %v273_v32 = vsel %vm1198_vm14, 0.0, %v272_v31 }
  0x8f   : > { %vm277_vm15 = vcmp.gt.f32.partialorder %v273_v32, %v1191_v28 }
  0x90   : > { %v727_v33 = vsel %vm277_vm15, 1.0, %v999_v4 }
  0x91   : > { %v173_v34 = vpop.permute.xlu1 %172  ;;  %v145_v35 = vpop.permute.xlu0 %144  ;;  %728 = vst [vmem:[%s1068_s20 + $0x12] sm:$0x3] %v727_v33 }
  0x92   : > { %v176_v37 = vrot.slane %v173_v34, 1  ;;  %v148_v38 = vrot.slane %v145_v35, 1  ;;  %v307_v39 = vpop.permute.xlu2 %306 }
  0x93   : > { %v309_v40 = vrot.slane %v307_v39, 1 }
  0x94   : > { %v178_v41 = vsel %vm174_vm2, %v173_v34, %v176_v37  ;;  %v150_v42 = vsel %vm1467_vm13, %v145_v35, %v148_v38 }
  0x95   : > { %v180_v43 = vsel %vm1214_vm3, 0.0, %v178_v41  ;;  %v152_v44 = vsel %vm1198_vm14, 0.0, %v150_v42  ;;  %v311_v45 = vsel %vm1468_vm9, %v307_v39, %v309_v40 }
  0x96   : > { %vm181_vm11 = vcmp.gt.f32.partialorder %v180_v43, %v1177_v23  ;;  %vm156_vm15 = vcmp.gt.f32.partialorder %v152_v44, %v1177_v23  ;;  %v312_v46 = vsel %vm1161_vm7, 0.0, %v311_v45 }
  0x97   : > { %v714_v47 = vsel %vm181_vm11, 1.0, %v999_v4  ;;  %v711_v48 = vsel %vm156_vm15, 1.0, %v999_v4  ;;  %vm313_vm13 = vcmp.gt.f32.partialorder %v312_v46, %v1191_v28  ;;  %vm1469_vm15 = vcmp.ge.s32.totalorder %v1138_v6, 111 }
  0x98   : > { %715 = vst [vmem:[%s1068_s20 + $0x4] sm:$0x3] %v714_v47  ;;  %v733_v49 = vsel %vm313_vm13, 1.0, %v999_v4 }
  0x99   : > { %159 = vst [vmem:[%s1068_s20] sm:$0x3] %v711_v48  ;;  %v187_v50 = vpop.permute.xlu1 %186  ;;  %v161_v51 = vpop.permute.xlu0 %160 }
  0x9a   : > { %v190_v52 = vrot.slane %v187_v50, 1  ;;  %v163_v53 = vrot.slane %v161_v51, 1  ;;  %734 = vst [vmem:[%s1068_s20 + $0x18] sm:$0x3] %v733_v49  ;;  %v350_v54 = vpop.permute.xlu2 %349  ;;  %v1309_v49 = vrot.slane %v1104_v3, 1 }
  0x9b   : > { %v352_v55 = vrot.slane %v350_v54, 7 }
  0x9c   : > { %v192_v56 = vsel %vm1468_vm9, %v187_v50, %v190_v52  ;;  %v165_v57 = vsel %vm133_vm10, %v161_v51, %v163_v53 }
  0x9d   : > { %v193_v58 = vsel %vm1161_vm7, 0.0, %v192_v56  ;;  %v166_v59 = vsel %vm1184_vm12, 0.0, %v165_v57  ;;  %v354_v60 = vsel %vm140_vm4, %v350_v54, %v352_v55  ;;  %v327_v54 = vrot.slane %v1085_v1, 7 }
  0x9e   : > { %vm194_vm13 = vcmp.gt.f32.partialorder %v193_v58, %v1177_v23  ;;  %vm167_vm11 = vcmp.gt.f32.partialorder %v166_v59, %v1177_v23  ;;  %v356_v61 = vrot.slane %v354_v60, 2 }
  0x9f   : > { %v716_v62 = vsel %vm194_vm13, 1.0, %v999_v4  ;;  %v712_v63 = vsel %vm167_vm11, 1.0, %v999_v4  ;;  %vm1266_vm13 = vmor %vm1156_vm5, %vm1143_vm1 }
  0xa0   : > { %717 = vst [vmem:[%s1068_s20 + $0x6] sm:$0x3] %v716_v62  ;;  %v358_v0 = vsel %vm1156_vm5, 0.0, %v356_v61 }
  0xa1   : > { %713 = vst [vmem:[%s1068_s20 + $0x2] sm:$0x3] %v712_v63  ;;  %v249_v5 = vpop.permute.xlu1 %248  ;;  %v234_v7 = vpop.permute.xlu0 %233  ;;  %vm359_vm9 = vcmp.gt.f32.partialorder %v358_v0, %v1191_v28 }
  0xa2   : > { %v252_v8 = vrot.slane %v249_v5, 7  ;;  %v236_v9 = vrot.slane %v234_v7, 7  ;;  %v740_v10 = vsel %vm359_vm9, 1.0, %v999_v4  ;;  %v464_v12 = vpop.permute.xlu2 %463 }
  0xa3   : > { %741 = vst [vmem:[%s1068_s20 + $0x20] sm:$0x3] %v740_v10  ;;  %v466_v13 = vrot.slane %v464_v12, 7 }
  0xa4   : > { %v254_v15 = vsel %vm1469_vm15, %v249_v5, %v252_v8  ;;  %v238_v17 = vsel %vm140_vm4, %v234_v7, %v236_v9 }
  0xa5   : > { %v257_v18 = vrot.slane %v254_v15, 2  ;;  %v240_v21 = vrot.slane %v238_v17, 2  ;;  %v468_v22 = vsel %vm140_vm4, %v464_v12, %v466_v13  ;;  %v441_v15 = vrot.slane %v1099_v2, 7 }
  0xa6   : > { %v470_v24 = vrot.slane %v468_v22, 2 }
  0xa7   : > { %v259_v26 = vsel %vm1266_vm13, 0.0, %v257_v18  ;;  %v242_v27 = vsel %vm1156_vm5, 0.0, %v240_v21 }
  0xa8   : > { %vm260_vm9 = vcmp.gt.f32.partialorder %v259_v26, %v1177_v23  ;;  %vm243_vm11 = vcmp.gt.f32.partialorder %v242_v27, %v1177_v23  ;;  %v472_v31 = vsel %vm1156_vm5, 0.0, %v470_v24 }
  0xa9   : > { %v725_v32 = vsel %vm260_vm9, 1.0, %v999_v4  ;;  %v723_v33 = vsel %vm243_vm11, 1.0, %v999_v4  ;;  %v295_v34 = vpop.permute.xlu1 %294  ;;  %v283_v35 = vpop.permute.xlu0 %282  ;;  %vm473_vm15 = vcmp.gt.f32.partialorder %v472_v31, %v1281_v29 }
  0xaa   : > { %726 = vst [vmem:[%s1068_s20 + $0x10] sm:$0x3] %v725_v32  ;;  %v297_v37 = vrot.slane %v295_v34, 1  ;;  %v285_v38 = vrot.slane %v283_v35, 1  ;;  %v757_v39 = vsel %vm473_vm15, 1.0, %v999_v4  ;;  %v578_v40 = vpop.permute.xlu2 %577 }
  0xab   : > { %724 = vst [vmem:[%s1068_s20 + $0xe] sm:$0x3] %v723_v33  ;;  %v580_v23 = vrot.slane %v578_v40, 7 }
  0xac   : > { %v299_v41 = vsel %vm174_vm2, %v295_v34, %v297_v37  ;;  %v287_v42 = vsel %vm133_vm10, %v283_v35, %v285_v38  ;;  %758 = vst [vmem:[%s1068_s20 + $0x32] sm:$0x3] %v757_v39 }
  0xad   : > { %v300_v43 = vsel %vm1214_vm3, 0.0, %v299_v41  ;;  %v288_v44 = vsel %vm1184_vm12, 0.0, %v287_v42  ;;  %v582_v45 = vsel %vm140_vm4, %v578_v40, %v580_v23 }
  0xae   : > { %vm301_vm15 = vcmp.gt.f32.partialorder %v300_v43, %v1191_v28  ;;  %vm289_vm9 = vcmp.gt.f32.partialorder %v288_v44, %v1191_v28  ;;  %v584_v46 = vrot.slane %v582_v45, 2 }
  0xaf   : > { %v731_v47 = vsel %vm301_vm15, 1.0, %v999_v4  ;;  %v729_v48 = vsel %vm289_vm9, 1.0, %v999_v4  ;;  %vm1488_vm9 = vcmp.ge.s32.totalorder %v1138_v6, 111 }
  0xb0   : > { %732 = vst [vmem:[%s1068_s20 + $0x16] sm:$0x3] %v731_v47  ;;  %v586_v50 = vsel %vm1156_vm5, 0.0, %v584_v46 }
  0xb1   : > { %730 = vst [vmem:[%s1068_s20 + $0x14] sm:$0x3] %v729_v48  ;;  %v335_v51 = vpop.permute.xlu1 %334  ;;  %v321_v52 = vpop.permute.xlu0 %320  ;;  %vm587_vm4 = vcmp.gt.f32.partialorder %v586_v50, %v1309_v49 }
  0xb2   : > { %v337_v53 = vrot.slane %v335_v51, 7  ;;  %v323_v55 = vrot.slane %v321_v52, 7  ;;  %v774_v56 = vsel %vm587_vm4, 1.0, %v999_v4  ;;  %v397_v57 = vpop.permute.xlu2 %396 }
  0xb3   : > { %775 = vst [vmem:[%s1068_s20 + $0x44] sm:$0x3] %v774_v56  ;;  %v399_v58 = vrot.slane %v397_v57, 1 }
  0xb4   : > { %v339_v59 = vsel %vm218_vm6, %v335_v51, %v337_v53  ;;  %v325_v16 = vsel %vm203_vm0, %v321_v52, %v323_v55 }
  0xb5   : > { %v341_v60 = vrot.slane %v339_v59, 2  ;;  %v326_v61 = vsel %vm1143_vm1, 0.0, %v325_v16  ;;  %v401_v1 = vsel %vm133_vm10, %v397_v57, %v399_v58 }
  0xb6   : > { %vm329_vm5 = vcmp.gt.f32.partialorder %v326_v61, %v327_v54  ;;  %v402_v62 = vsel %vm1184_vm12, 0.0, %v401_v1 }
  0xb7   : > { %v343_v63 = vsel %vm1169_vm8, 0.0, %v341_v60  ;;  %v736_v0 = vsel %vm329_vm5, 1.0, %v999_v4  ;;  %vm403_vm11 = vcmp.gt.f32.partialorder %v402_v62, %v1281_v29 }
  0xb8   : > { %vm344_vm15 = vcmp.gt.f32.partialorder %v343_v63, %v1191_v28  ;;  %737 = vst [vmem:[%s1068_s20 + $0x1a] sm:$0xc] %v736_v0  ;;  %v746_v5 = vsel %vm403_vm11, 1.0, %v999_v4 }
  0xb9   : > { %v738_v7 = vsel %vm344_vm15, 1.0, %v999_v4  ;;  %v449_v8 = vpop.permute.xlu1 %448  ;;  %v365_v9 = vpop.permute.xlu0 %364  ;;  %747 = vst [vmem:[%s1068_s20 + $0x26] sm:$0x3] %v746_v5  ;;  %vm1489_vm15 = vmmov %vm1488_vm9 }
  0xba   : > { %739 = vst [vmem:[%s1068_s20 + $0x1e] sm:$0x3] %v738_v7  ;;  %v451_v10 = vrot.slane %v449_v8, 7  ;;  %v367_v12 = vrot.slane %v365_v9, 7  ;;  %v435_v13 = vpop.permute.xlu2 %434 }
  0xbb   : > { %v437_v17 = vrot.slane %v435_v13, 7 }
  0xbc   : > { %v453_v18 = vsel %vm218_vm6, %v449_v8, %v451_v10  ;;  %v369_v21 = vsel %vm1488_vm9, %v365_v9, %v367_v12 }
  0xbd   : > { %v455_v22 = vrot.slane %v453_v18, 2  ;;  %v371_v24 = vrot.slane %v369_v21, 2  ;;  %v439_v26 = vsel %vm203_vm0, %v435_v13, %v437_v17 }
  0xbe   : > { %v440_v27 = vsel %vm1143_vm1, 0.0, %v439_v26 }
  0xbf   : > { %v457_v2 = vsel %vm1169_vm8, 0.0, %v455_v22  ;;  %v373_v31 = vsel %vm1266_vm13, 0.0, %v371_v24  ;;  %vm443_vm4 = vcmp.gt.f32.partialorder %v440_v27, %v441_v15 }
  0xc0   : > { %vm458_vm5 = vcmp.gt.f32.partialorder %v457_v2, %v1281_v29  ;;  %vm374_vm11 = vcmp.gt.f32.partialorder %v373_v31, %v1191_v28  ;;  %v753_v32 = vsel %vm443_vm4, 1.0, %v999_v4 }
  0xc1   : > { %v755_v33 = vsel %vm458_vm5, 1.0, %v999_v4  ;;  %v742_v34 = vsel %vm374_vm11, 1.0, %v999_v4  ;;  %v563_v35 = vpop.permute.xlu1 %562  ;;  %v479_v37 = vpop.permute.xlu0 %478  ;;  %754 = vst [vmem:[%s1068_s20 + $0x2c] sm:$0xc] %v753_v32  ;;  %vm1491_vm5 = vmmov %vm1489_vm15 }
  0xc2   : > { %756 = vst [vmem:[%s1068_s20 + $0x30] sm:$0x3] %v755_v33  ;;  %v565_v38 = vrot.slane %v563_v35, 7  ;;  %v481_v39 = vrot.slane %v479_v37, 7  ;;  %v523_v40 = vpop.permute.xlu2 %522 }
  0xc3   : > { %743 = vst [vmem:[%s1068_s20 + $0x22] sm:$0x3] %v742_v34  ;;  %v525_v23 = vrot.slane %v523_v40, 1 }
  0xc4   : > { %v567_v41 = vsel %vm218_vm6, %v563_v35, %v565_v38  ;;  %v483_v28 = vsel %vm1489_vm15, %v479_v37, %v481_v39 }
  0xc5   : > { %v569_v42 = vrot.slane %v567_v41, 2  ;;  %v485_v43 = vrot.slane %v483_v28, 2  ;;  %v527_v44 = vsel %vm174_vm2, %v523_v40, %v525_v23 }
  0xc6   : > { %v528_v45 = vsel %vm1214_vm3, 0.0, %v527_v44 }
  0xc7   : > { %v571_v46 = vsel %vm1169_vm8, 0.0, %v569_v42  ;;  %v487_v47 = vsel %vm1266_vm13, 0.0, %v485_v43  ;;  %vm529_vm6 = vcmp.gt.f32.partialorder %v528_v45, %v1309_v49  ;;  %vm1490_vm8 = vcmp.lt.s32.totalorder %v1138_v6, 17 }
  0xc8   : > { %vm572_vm9 = vcmp.gt.f32.partialorder %v571_v46, %v1309_v49  ;;  %vm488_vm4 = vcmp.gt.f32.partialorder %v487_v47, %v1281_v29  ;;  %v765_v48 = vsel %vm529_vm6, 1.0, %v999_v4  ;;  %vm1492_vm6 = vcmp.lt.s32.totalorder %v1138_v6, 1 }
  0xc9   : > { %v772_v50 = vsel %vm572_vm9, 1.0, %v999_v4  ;;  %v759_v51 = vsel %vm488_vm4, 1.0, %v999_v4  ;;  %v382_v52 = vpop.permute.xlu1 %381  ;;  %v593_v53 = vpop.permute.xlu0 %592  ;;  %766 = vst [vmem:[%s1068_s20 + $0x3a] sm:$0x3] %v765_v48 }
  0xca   : > { %773 = vst [vmem:[%s1068_s20 + $0x42] sm:$0x3] %v772_v50  ;;  %v384_v20 = vrot.slane %v382_v52, 1  ;;  %v595_v54 = vrot.slane %v593_v53, 7 }
  0xcb   : > { %760 = vst [vmem:[%s1068_s20 + $0x34] sm:$0x3] %v759_v51 }
  0xcc   : > { %v386_v55 = vsel %vm1490_vm8, %v382_v52, %v384_v20  ;;  %v597_v56 = vsel %vm1491_vm5, %v593_v53, %v595_v54 }
  0xcd   : > { %v387_v57 = vsel %vm1198_vm14, 0.0, %v386_v55  ;;  %v599_v58 = vrot.slane %v597_v56, 2 }
  0xce   : > { %vm391_vm11 = vcmp.gt.f32.partialorder %v387_v57, %v1281_v29 }
  0xcf   : > { %v744_v59 = vsel %vm391_vm11, 1.0, %v999_v4  ;;  %v601_v16 = vsel %vm1266_vm13, 0.0, %v599_v58 }
  0xd0   : > { %745 = vst [vmem:[%s1068_s20 + $0x24] sm:$0x3] %v744_v59  ;;  %vm602_vm15 = vcmp.gt.f32.partialorder %v601_v16, %v1309_v49 }
  0xd1   : > { %v776_v60 = vsel %vm602_vm15, 1.0, %v999_v4  ;;  %v421_v61 = vpop.permute.xlu1 %420  ;;  %v409_v1 = vpop.permute.xlu0 %408 }
  0xd2   : > { %777 = vst [vmem:[%s1068_s20 + $0x46] sm:$0x3] %v776_v60  ;;  %v423_v62 = vrot.slane %v421_v61, 1  ;;  %v411_v63 = vrot.slane %v409_v1, 1 }
  0xd4   : > { %v425_v0 = vsel %vm1492_vm6, %v421_v61, %v423_v62  ;;  %v413_v5 = vsel %vm174_vm2, %v409_v1, %v411_v63  ;;  %vm1493_vm2 = vmmov %vm1490_vm8 }
  0xd5   : > { %v426_v14 = vsel %vm1161_vm7, 0.0, %v425_v0  ;;  %v414_v7 = vsel %vm1214_vm3, 0.0, %v413_v5 }
  0xd6   : > { %vm427_vm13 = vcmp.gt.f32.partialorder %v426_v14, %v1281_v29  ;;  %vm415_vm9 = vcmp.gt.f32.partialorder %v414_v7, %v1281_v29 }
  0xd7   : > { %v750_v8 = vsel %vm427_vm13, 1.0, %v999_v4  ;;  %v748_v9 = vsel %vm415_vm9, 1.0, %v999_v4 }
  0xd8   : > { %751 = vst [vmem:[%s1068_s20 + $0x2a] sm:$0x3] %v750_v8 }
  0xd9   : > { %749 = vst [vmem:[%s1068_s20 + $0x28] sm:$0x3] %v748_v9  ;;  %v511_v10 = vpop.permute.xlu1 %510  ;;  %v496_v12 = vpop.permute.xlu0 %495 }
  0xda   : > { %v513_v13 = vrot.slane %v511_v10, 1  ;;  %v498_v15 = vrot.slane %v496_v12, 1 }
  0xdc   : > { %v515_v36 = vsel %vm133_vm10, %v511_v10, %v513_v13  ;;  %v500_v17 = vsel %vm1493_vm2, %v496_v12, %v498_v15  ;;  %vm1494_vm10 = vmmov %vm1492_vm6 }
  0xdd   : > { %v516_v29 = vsel %vm1184_vm12, 0.0, %v515_v36  ;;  %v501_v18 = vsel %vm1198_vm14, 0.0, %v500_v17 }
  0xde   : > { %vm517_vm3 = vcmp.gt.f32.partialorder %v516_v29, %v1309_v49  ;;  %vm505_vm4 = vcmp.gt.f32.partialorder %v501_v18, %v1309_v49 }
  0xdf   : > { %v763_v21 = vsel %vm517_vm3, 1.0, %v999_v4  ;;  %v761_v22 = vsel %vm505_vm4, 1.0, %v999_v4 }
  0xe0   : > { %764 = vst [vmem:[%s1068_s20 + $0x38] sm:$0x3] %v763_v21 }
  0xe1   : > { %762 = vst [vmem:[%s1068_s20 + $0x36] sm:$0x3] %v761_v22  ;;  %v549_v24 = vpop.permute.xlu1 %548  ;;  %v535_v26 = vpop.permute.xlu0 %534 }
  0xe2   : > { %v551_v30 = vrot.slane %v549_v24, 7  ;;  %v537_v27 = vrot.slane %v535_v26, 1 }
  0xe4   : > { %v553_v2 = vsel %vm203_vm0, %v549_v24, %v551_v30  ;;  %v539_v31 = vsel %vm1494_vm10, %v535_v26, %v537_v27 }
  0xe5   : > { %v554_v32 = vsel %vm1143_vm1, 0.0, %v553_v2  ;;  %v540_v33 = vsel %vm1161_vm7, 0.0, %v539_v31 }
  0xe6   : > { %vm557_vm12 = vcmp.gt.f32.partialorder %v554_v32, %v555_v25  ;;  %vm541_vm14 = vcmp.gt.f32.partialorder %v540_v33, %v1309_v49 }
  0xe7   : > { %v770_v3 = vsel %vm557_vm12, 1.0, %v999_v4  ;;  %v767_v34 = vsel %vm541_vm14, 1.0, %v999_v4 }
  0xe8   : > { %771 = vst [vmem:[%s1068_s20 + $0x3e] sm:$0xc] %v770_v3 }
  0xe9   : > { %768 = vst [vmem:[%s1068_s20 + $0x3c] sm:$0x3] %v767_v34 }
  0xea   : > { %789 = dma.vmem_to_hbm [thread:$0]  (%p1047_p7), %s623_s8, 1152, %s625_s4, %s608_s5, %s986_s27, %s986_s27, %s988_s29  }
  0xeb PF: > { %p795_p9 = scmp.ge.s32.totalorder %s983_s9, 1  ;;  %s639_s11 = sand.u32 1, %s971_s6  }
  0xec   : > { %s640_s12 = scalar_lea.sflag [#allocation5], %s639_s11 }
  0xed   : > { %p792_p10 = pnand %p795_p9, %p1040_p6 }
  0xef   : > { %p793_p11 = pneg %p792_p10 }
  0xf1   : > { %966 = dma.done.wait (%p793_p11), %s640_s12, 1152  }
  0xf2   : > { %968 = vsyncadd (%p793_p11), %s640_s12, 4294966144  ;;  %s14_s9 = sadd.s32 1, %s983_s9   ;;  %s1495_s6 = smov %s975_s7 }
  0xf3   : > { %p11_p12 = scmp.ge.s32.totalorder %s14_s9, 3   ;;  %s1496_s7 = smov %s1045_s15 }
  0xf4   : > { %s1497_s8 = smov %s1499_s10 }
  0xf5   :  { %13 = sbr.rel (!%p11_p12) target bundleno = 3 (0x3), region = 91 }
  0xfa   :  { %646 = vsyncpa [#allocation5], 1 }
  0xfb   :  { %648 = vsyncpa [#allocation5 + $0x1], 1 }
  0xfc   :  { %649 = vsyncmov [#allocation3] }
  0xff   :  { %s650_s14 = vpop.sfrf %649 }
 0x100   :  { %p783_p13 = scmp.ne.s32.totalorder %s650_s14, 0 }
 0x102   :  { %654 = shalt.err (%p783_p13)  }
 0x103   :  { %656 = vsyncmov [#allocation3 + $0x1] }
 0x106   :  { %s657_s16 = vpop.sfrf %656 }
 0x107   :  { %p784_p0 = scmp.ne.s32.totalorder %s657_s16, 0 }
 0x109   :  { %661 = shalt.err (%p784_p0)  }
 0x10a   :  { %663 = vsyncmov [#allocation3 + $0x2] }
 0x10d   :  { %s664_s17 = vpop.sfrf %663 }
 0x10e   :  { %p785_p1 = scmp.ne.s32.totalorder %s664_s17, 0 }
 0x110   :  { %668 = shalt.err (%p785_p1)  }

</bundles_post_ra>
